<compile_context>
chip_gen: v5e
topology: v5e:2x2
jax: 0.10.0
libtpu: 0.0.40
codegen_flags: <defaults>
</compile_context>

<pallas_src>
import math

import jax
import jax.numpy as jnp
from jax.experimental import pallas as pl
from jax.experimental.pallas import tpu as pltpu

# ---------------- synthetic "BertConfig" ----------------
VOCAB = 100
TYPE_VOCAB = 2
MAX_POS = 32
HIDDEN = 32
NUM_HEADS = 2
HEAD_DIM = HIDDEN // NUM_HEADS
INTERMEDIATE = 4 * HIDDEN
NUM_LAYERS = 2
NUM_LABELS = 5          # output_size of the NER head
LOGIT_PAD = 128         # lane-dense padded class axis for the classifier head
LN_EPS = 1e-12
BATCH = 2
SEQ = 8


# ---------------- in-kernel math helpers ----------------
def _layer_norm(x, g, b):
    mu = jnp.mean(x, axis=-1, keepdims=True)
    var = jnp.mean(jnp.square(x - mu), axis=-1, keepdims=True)
    return (x - mu) * jax.lax.rsqrt(var + LN_EPS) * g + b


def _gelu(x):
    # TODO(synk): HF BERT default act is exact erf-GELU; tanh approximation used here
    # (the pure-JAX reference below uses the same approximation).
    c = math.sqrt(2.0 / math.pi)
    return 0.5 * x * (1.0 + jnp.tanh(c * (x + 0.044715 * x * x * x)))


# ---------------- fused Pallas kernel ----------------
def _fused_bert_ner_kernel(
        emb_ref, bias_ref, labels_ref,
        eg_ref, eb_ref,
        wq_ref, bq_ref, wk_ref, bk_ref, wv_ref, bv_ref,
        wo_ref, bo_ref, ln1g_ref, ln1b_ref,
        wi_ref, bi_ref, wf_ref, bf_ref, ln2g_ref, ln2b_ref,
        cw_ref, cb_ref,
        logits_ref, lsum_ref, lcnt_ref):
    # embedding LayerNorm
    x = _layer_norm(emb_ref[...].astype(jnp.float32), eg_ref[...], eb_ref[...])
    bias = bias_ref[...]                      # (BS, BS) block-diag + key-padding bias
    scale = 1.0 / math.sqrt(HEAD_DIM)

    # TODO(synk): at real BERT sizes, cast matmul operands to bf16 (f32 accumulation)
    # for v6e/v7x MXU throughput and tile the FFN over the intermediate dim to fit
    # v7x's 64 MiB VMEM; irrelevant at H=32.
    for l in range(NUM_LAYERS):               # static unroll; weights stay VMEM-resident
        attn = jnp.zeros(x.shape, jnp.float32)
        for h in range(NUM_HEADS):            # per-head weights: no 16-lane slices, no concat
            qh = jnp.dot(x, wq_ref[l, h], preferred_element_type=jnp.float32) + bq_ref[l, h]
            kh = jnp.dot(x, wk_ref[l, h], preferred_element_type=jnp.float32) + bk_ref[l, h]
            vh = jnp.dot(x, wv_ref[l, h], preferred_element_type=jnp.float32) + bv_ref[l, h]
            s = jnp.dot(qh, kh.T, preferred_element_type=jnp.float32) * scale + bias
            s = s - jnp.max(s, axis=-1, keepdims=True)
            p = jnp.exp(s)
            p = p / jnp.sum(p, axis=-1, keepdims=True)
            ctx = jnp.dot(p, vh, preferred_element_type=jnp.float32)
            attn = attn + jnp.dot(ctx, wo_ref[l, h], preferred_element_type=jnp.float32)
        h1 = _layer_norm(x + attn + bo_ref[l], ln1g_ref[l], ln1b_ref[l])
        inter = _gelu(jnp.dot(h1, wi_ref[l], preferred_element_type=jnp.float32) + bi_ref[l])
        ff = jnp.dot(inter, wf_ref[l], preferred_element_type=jnp.float32) + bf_ref[l]
        x = _layer_norm(h1 + ff, ln2g_ref[l], ln2b_ref[l])

    # classifier head into a lane-dense 128-wide buffer (pad columns biased to -1e9).
    # nn.Dropout(0.1) is identity at inference time.
    logits = jnp.dot(x, cw_ref[...], preferred_element_type=jnp.float32) + cb_ref[...]
    logits_ref[...] = logits

    # token-level cross entropy (ignore_index=-100) fused into the same kernel.
    labels = labels_ref[...]                                    # (BS, 1) int32
    m = jnp.max(logits, axis=-1, keepdims=True)
    lse = jnp.log(jnp.sum(jnp.exp(logits - m), axis=-1, keepdims=True)) + m
    logp = logits - lse
    cls_iota = jax.lax.broadcasted_iota(jnp.int32, logits.shape, 1)
    onehot = (cls_iota == labels).astype(jnp.float32)
    per_tok = -jnp.sum(onehot * logp, axis=-1, keepdims=True)   # (BS, 1)
    valid = (labels != -100).astype(jnp.float32)
    # NOTE: (1,1) VMEM outputs are padded to an (8,128) tile; an SMEM scalar output
    # would avoid the padded store, kept in VMEM for lowering robustness.
    lsum_ref[...] = jnp.sum(per_tok * valid, axis=(0, 1), keepdims=True)
    lcnt_ref[...] = jnp.sum(valid, axis=(0, 1), keepdims=True)


# ---------------- host-side weight packing ----------------
def _pack_params(params):
    L, H, NH, HD, I = NUM_LAYERS, HIDDEN, NUM_HEADS, HEAD_DIM, INTERMEDIATE

    def stack(name):
        return jnp.stack([lp[name] for lp in params["layers"]], axis=0)

    wq = stack("wq").reshape(L, H, NH, HD).transpose(0, 2, 1, 3)   # (L, NH, H, HD)
    wk = stack("wk").reshape(L, H, NH, HD).transpose(0, 2, 1, 3)
    wv = stack("wv").reshape(L, H, NH, HD).transpose(0, 2, 1, 3)
    bq = stack("bq").reshape(L, NH, 1, HD)
    bk = stack("bk").reshape(L, NH, 1, HD)
    bv = stack("bv").reshape(L, NH, 1, HD)
    wo = stack("wo").reshape(L, NH, HD, H)                          # rows are head-major
    bo = stack("bo").reshape(L, 1, H)
    ln1g = stack("ln1_g").reshape(L, 1, H)
    ln1b = stack("ln1_b").reshape(L, 1, H)
    wi = stack("wi")                                                # (L, H, I)
    bi = stack("bi").reshape(L, 1, I)
    wf = stack("wf")                                                # (L, I, H)
    bf = stack("bf").reshape(L, 1, H)
    ln2g = stack("ln2_g").reshape(L, 1, H)
    ln2b = stack("ln2_b").reshape(L, 1, H)

    # lane-dense classifier: pad class axis 5 -> 128; pad columns get a -1e9 bias so
    # they never win the softmax / never contribute to logsumexp.
    cls_w = jnp.zeros((H, LOGIT_PAD), jnp.float32).at[:, :NUM_LABELS].set(params["cls_w"])
    cls_b = jnp.full((1, LOGIT_PAD), -1e9, jnp.float32).at[0, :NUM_LABELS].set(params["cls_b"])

    eg = params["emb_ln_g"].reshape(1, H)
    eb = params["emb_ln_b"].reshape(1, H)

    return [eg, eb,
            wq, bq, wk, bk, wv, bv,
            wo, bo, ln1g, ln1b,
            wi, bi, wf, bf, ln2g, ln2b,
            cls_w, cls_b]


# ---------------- wrapper ----------------
def bert_ner_forward(params, input_ids, attention_mask, token_type_ids, labels=None):
    B, S = input_ids.shape
    BS = B * S

    # embedding gathers are glue (plain JAX); everything else is one Pallas kernel.
    pos_ids = jnp.arange(S)
    emb = (params["word_emb"][input_ids]
           + params["pos_emb"][pos_ids][None, :, :]
           + params["type_emb"][token_type_ids])
    emb2d = emb.reshape(BS, HIDDEN).astype(jnp.float32)

    # block-diagonal additive attention bias over the flattened [BS, BS] score matrix:
    # HF-style -1e4 for padded keys within a batch, -1e9 across batches (exp underflows
    # to exactly 0 -> numerically identical to per-batch softmax).
    key_bias = ((1.0 - attention_mask.astype(jnp.float32)) * -10000.0).reshape(BS)
    batch_id = jnp.repeat(jnp.arange(B), S)
    same_batch = batch_id[:, None] == batch_id[None, :]
    bias = jnp.where(same_batch, key_bias[None, :], -1e9).astype(jnp.float32)

    if labels is None:
        labels2d = jnp.full((BS, 1), -100, jnp.int32)
    else:
        labels2d = labels.reshape(BS, 1).astype(jnp.int32)

    operands = [emb2d, bias, labels2d] + _pack_params(params)

    vmem = pl.BlockSpec(memory_space=pltpu.MemorySpace.VMEM)
    logits_p, loss_sum, loss_cnt = pl.pallas_call(
        _fused_bert_ner_kernel,
        out_shape=(jax.ShapeDtypeStruct((BS, LOGIT_PAD), jnp.float32),
                   jax.ShapeDtypeStruct((1, 1), jnp.float32),
                   jax.ShapeDtypeStruct((1, 1), jnp.float32)),
        in_specs=[vmem] * len(operands),
        out_specs=(vmem, vmem, vmem),
    )(*operands)

    logits = logits_p[:, :NUM_LABELS].reshape(B, S, NUM_LABELS)
    loss = None
    if labels is not None:
        # guard against the all-ignored (-100) case
        loss = (loss_sum / jnp.maximum(loss_cnt, 1.0))[0, 0]
    return logits, loss


# ---------------- pure-JAX reference (same math) for sanity ----------------
def reference_forward(params, input_ids, attention_mask, token_type_ids, labels):
    B, S = input_ids.shape
    pos_ids = jnp.arange(S)
    x = (params["word_emb"][input_ids]
         + params["pos_emb"][pos_ids][None, :, :]
         + params["type_emb"][token_type_ids])
    x = _layer_norm(x, params["emb_ln_g"], params["emb_ln_b"])
    mask_bias = ((1.0 - attention_mask.astype(jnp.float32)) * -10000.0)[:, None, :]
    for lp in params["layers"]:
        q = x @ lp["wq"] + lp["bq"]
        k = x @ lp["wk"] + lp["bk"]
        v = x @ lp["wv"] + lp["bv"]
        scale = 1.0 / math.sqrt(HEAD_DIM)
        ctxs = []
        for h in range(NUM_HEADS):
            sl = slice(h * HEAD_DIM, (h + 1) * HEAD_DIM)
            s = jnp.einsum("bqd,bkd->bqk", q[..., sl], k[..., sl]) * scale + mask_bias
            p = jax.nn.softmax(s, axis=-1)
            ctxs.append(jnp.einsum("bqk,bkd->bqd", p, v[..., sl]))
        ctx = jnp.concatenate(ctxs, axis=-1)
        h1 = _layer_norm(x + ctx @ lp["wo"] + lp["bo"], lp["ln1_g"], lp["ln1_b"])
        ff = _gelu(h1 @ lp["wi"] + lp["bi"]) @ lp["wf"] + lp["bf"]
        x = _layer_norm(h1 + ff, lp["ln2_g"], lp["ln2_b"])
    logits = x @ params["cls_w"] + params["cls_b"]
    logp = jax.nn.log_softmax(logits.reshape(-1, NUM_LABELS), axis=-1)
    lab = labels.reshape(-1)
    valid = (lab != -100)
    safe = jnp.where(valid, lab, 0)
    per_tok = -jnp.take_along_axis(logp, safe[:, None], axis=-1)[:, 0]
    loss = jnp.sum(per_tok * valid) / jnp.sum(valid)
    return logits, loss


# ---------------- deterministic parameter init ----------------
def init_params(key):
    std = 0.02

    def nrm(k, shape):
        return jax.random.normal(k, shape, jnp.float32) * std

    keys = iter(jax.random.split(key, 8 + NUM_LAYERS * 8))
    params = {
        "word_emb": nrm(next(keys), (VOCAB, HIDDEN)),
        "pos_emb": nrm(next(keys), (MAX_POS, HIDDEN)),
        "type_emb": nrm(next(keys), (TYPE_VOCAB, HIDDEN)),
        "emb_ln_g": jnp.ones((HIDDEN,), jnp.float32),
        "emb_ln_b": jnp.zeros((HIDDEN,), jnp.float32),
        "cls_w": nrm(next(keys), (HIDDEN, NUM_LABELS)),
        "cls_b": jnp.zeros((NUM_LABELS,), jnp.float32),
        "layers": [],
    }
    for _ in range(NUM_LAYERS):
        lp = {
            "wq": nrm(next(keys), (HIDDEN, HIDDEN)), "bq": jnp.zeros((HIDDEN,), jnp.float32),
            "wk": nrm(next(keys), (HIDDEN, HIDDEN)), "bk": jnp.zeros((HIDDEN,), jnp.float32),
            "wv": nrm(next(keys), (HIDDEN, HIDDEN)), "bv": jnp.zeros((HIDDEN,), jnp.float32),
            "wo": nrm(next(keys), (HIDDEN, HIDDEN)), "bo": jnp.zeros((HIDDEN,), jnp.float32),
            "ln1_g": jnp.ones((HIDDEN,), jnp.float32), "ln1_b": jnp.zeros((HIDDEN,), jnp.float32),
            "wi": nrm(next(keys), (HIDDEN, INTERMEDIATE)), "bi": jnp.zeros((INTERMEDIATE,), jnp.float32),
            "wf": nrm(next(keys), (INTERMEDIATE, HIDDEN)), "bf": jnp.zeros((HIDDEN,), jnp.float32),
            "ln2_g": jnp.ones((HIDDEN,), jnp.float32), "ln2_b": jnp.zeros((HIDDEN,), jnp.float32),
        }
        params["layers"].append(lp)
    return params


if __name__ == "__main__":
    root = jax.random.PRNGKey(0)
    k_param, k_ids, k_lab = jax.random.split(root, 3)

    params = init_params(k_param)

    input_ids = jax.random.randint(k_ids, (BATCH, SEQ), 0, VOCAB, dtype=jnp.int32)
    token_type_ids = jnp.zeros((BATCH, SEQ), jnp.int32)
    attention_mask = jnp.ones((BATCH, SEQ), jnp.int32).at[:, -2:].set(0)  # last 2 tokens padded
    labels = jax.random.randint(k_lab, (BATCH, SEQ), 0, NUM_LABELS, dtype=jnp.int32)
    labels = jnp.where(attention_mask == 1, labels, -100)                  # ignore padded positions

    logits, loss = bert_ner_forward(params, input_ids, attention_mask, token_type_ids, labels)
    jax.block_until_ready(logits)
    jax.block_until_ready(loss)

    ref_logits, ref_loss = reference_forward(params, input_ids, attention_mask,
                                             token_type_ids, labels)
    assert jnp.allclose(logits, ref_logits, rtol=1e-3, atol=1e-3), "logits mismatch"
    assert jnp.allclose(loss, ref_loss, rtol=1e-3, atol=1e-3), "loss mismatch"

    print("KERNEL_OK")
</pallas_src>

<mosaic_0001>
module attributes {stable_mosaic.version = 11 : i64} {
  func.func @_fused_bert_ner_kernel(%arg0: memref<16x32xf32, #tpu.memory_space<vmem>>, %arg1: memref<16x16xf32, #tpu.memory_space<vmem>>, %arg2: memref<16x1xi32, #tpu.memory_space<vmem>>, %arg3: memref<1x32xf32, #tpu.memory_space<vmem>>, %arg4: memref<1x32xf32, #tpu.memory_space<vmem>>, %arg5: memref<2x2x32x16xf32, #tpu.memory_space<vmem>>, %arg6: memref<2x2x1x16xf32, #tpu.memory_space<vmem>>, %arg7: memref<2x2x32x16xf32, #tpu.memory_space<vmem>>, %arg8: memref<2x2x1x16xf32, #tpu.memory_space<vmem>>, %arg9: memref<2x2x32x16xf32, #tpu.memory_space<vmem>>, %arg10: memref<2x2x1x16xf32, #tpu.memory_space<vmem>>, %arg11: memref<2x2x16x32xf32, #tpu.memory_space<vmem>>, %arg12: memref<2x1x32xf32, #tpu.memory_space<vmem>>, %arg13: memref<2x1x32xf32, #tpu.memory_space<vmem>>, %arg14: memref<2x1x32xf32, #tpu.memory_space<vmem>>, %arg15: memref<2x32x128xf32, #tpu.memory_space<vmem>>, %arg16: memref<2x1x128xf32, #tpu.memory_space<vmem>>, %arg17: memref<2x128x32xf32, #tpu.memory_space<vmem>>, %arg18: memref<2x1x32xf32, #tpu.memory_space<vmem>>, %arg19: memref<2x1x32xf32, #tpu.memory_space<vmem>>, %arg20: memref<2x1x32xf32, #tpu.memory_space<vmem>>, %arg21: memref<32x128xf32, #tpu.memory_space<vmem>>, %arg22: memref<1x128xf32, #tpu.memory_space<vmem>>, %arg23: memref<16x128xf32, #tpu.memory_space<vmem>>, %arg24: memref<1x1xf32, #tpu.memory_space<vmem>>, %arg25: memref<1x1xf32, #tpu.memory_space<vmem>>) attributes {dimension_semantics = [], scalar_prefetch = 0 : i64, scratch_operands = 0 : i64, tpu.core_type = #tpu.core_type<tc>} {
    %c0 = arith.constant 0 : index
    %c0_0 = arith.constant 0 : index
    %0 = vector.load %arg0[%c0, %c0_0] : memref<16x32xf32, #tpu.memory_space<vmem>>, vector<16x32xf32>
    %c0_1 = arith.constant 0 : index
    %c0_2 = arith.constant 0 : index
    %1 = vector.load %arg3[%c0_1, %c0_2] : memref<1x32xf32, #tpu.memory_space<vmem>>, vector<1x32xf32>
    %c0_3 = arith.constant 0 : index
    %c0_4 = arith.constant 0 : index
    %2 = vector.load %arg4[%c0_3, %c0_4] : memref<1x32xf32, #tpu.memory_space<vmem>>, vector<1x32xf32>
    %cst = arith.constant dense<0.000000e+00> : vector<16xf32>
    %3 = vector.multi_reduction <add>, %0, %cst [1] : vector<16x32xf32> to vector<16xf32>
    %4 = vector.shape_cast %3 : vector<16xf32> to vector<16x1xf32>
    %cst_5 = arith.constant 3.200000e+01 : f32
    %5 = vector.broadcast %cst_5 : f32 to vector<16x1xf32>
    %6 = arith.divf %4, %5 : vector<16x1xf32>
    %7 = vector.broadcast %6 : vector<16x1xf32> to vector<16x32xf32>
    %8 = arith.subf %0, %7 : vector<16x32xf32>
    %9 = arith.mulf %8, %8 : vector<16x32xf32>
    %cst_6 = arith.constant dense<0.000000e+00> : vector<16xf32>
    %10 = vector.multi_reduction <add>, %9, %cst_6 [1] : vector<16x32xf32> to vector<16xf32>
    %11 = vector.shape_cast %10 : vector<16xf32> to vector<16x1xf32>
    %cst_7 = arith.constant 3.200000e+01 : f32
    %12 = vector.broadcast %cst_7 : f32 to vector<16x1xf32>
    %13 = arith.divf %11, %12 : vector<16x1xf32>
    %14 = vector.broadcast %6 : vector<16x1xf32> to vector<16x32xf32>
    %15 = arith.subf %0, %14 : vector<16x32xf32>
    %cst_8 = arith.constant 9.99999996E-13 : f32
    %16 = vector.broadcast %cst_8 : f32 to vector<16x1xf32>
    %17 = arith.addf %13, %16 : vector<16x1xf32>
    %18 = math.rsqrt %17 : vector<16x1xf32>
    %19 = vector.broadcast %18 : vector<16x1xf32> to vector<16x32xf32>
    %20 = arith.mulf %15, %19 : vector<16x32xf32>
    %21 = vector.broadcast %1 : vector<1x32xf32> to vector<16x32xf32>
    %22 = arith.mulf %20, %21 : vector<16x32xf32>
    %23 = vector.broadcast %2 : vector<1x32xf32> to vector<16x32xf32>
    %24 = arith.addf %22, %23 : vector<16x32xf32>
    %c0_9 = arith.constant 0 : index
    %c0_10 = arith.constant 0 : index
    %25 = vector.load %arg1[%c0_9, %c0_10] : memref<16x16xf32, #tpu.memory_space<vmem>>, vector<16x16xf32>
    %cst_11 = arith.constant 0.000000e+00 : f32
    %26 = vector.broadcast %cst_11 : f32 to vector<16x32xf32>
    %c0_12 = arith.constant 0 : index
    %c0_13 = arith.constant 0 : index
    %c0_14 = arith.constant 0 : index
    %c0_15 = arith.constant 0 : index
    %27 = vector.load %arg5[%c0_12, %c0_13, %c0_14, %c0_15] : memref<2x2x32x16xf32, #tpu.memory_space<vmem>>, vector<1x1x32x16xf32>
    %28 = vector.shape_cast %27 : vector<1x1x32x16xf32> to vector<32x16xf32>
    %cst_16 = arith.constant dense<0.000000e+00> : vector<16x16xf32>
    %29 = tpu.matmul %24, %28, %cst_16 {dimension_numbers = #tpu.dot_dimension_numbers<[1], [0], [0], [1], [0, 0, 1, 1], [], []>} : vector<16x32xf32>, vector<32x16xf32>, vector<16x16xf32> -> vector<16x16xf32>
    %c0_17 = arith.constant 0 : index
    %c0_18 = arith.constant 0 : index
    %c0_19 = arith.constant 0 : index
    %c0_20 = arith.constant 0 : index
    %30 = vector.load %arg6[%c0_17, %c0_18, %c0_19, %c0_20] : memref<2x2x1x16xf32, #tpu.memory_space<vmem>>, vector<1x1x1x16xf32>
    %31 = vector.shape_cast %30 : vector<1x1x1x16xf32> to vector<1x16xf32>
    %32 = vector.broadcast %31 : vector<1x16xf32> to vector<16x16xf32>
    %33 = arith.addf %29, %32 : vector<16x16xf32>
    %c0_21 = arith.constant 0 : index
    %c0_22 = arith.constant 0 : index
    %c0_23 = arith.constant 0 : index
    %c0_24 = arith.constant 0 : index
    %34 = vector.load %arg7[%c0_21, %c0_22, %c0_23, %c0_24] : memref<2x2x32x16xf32, #tpu.memory_space<vmem>>, vector<1x1x32x16xf32>
    %35 = vector.shape_cast %34 : vector<1x1x32x16xf32> to vector<32x16xf32>
    %cst_25 = arith.constant dense<0.000000e+00> : vector<16x16xf32>
    %36 = tpu.matmul %24, %35, %cst_25 {dimension_numbers = #tpu.dot_dimension_numbers<[1], [0], [0], [1], [0, 0, 1, 1], [], []>} : vector<16x32xf32>, vector<32x16xf32>, vector<16x16xf32> -> vector<16x16xf32>
    %c0_26 = arith.constant 0 : index
    %c0_27 = arith.constant 0 : index
    %c0_28 = arith.constant 0 : index
    %c0_29 = arith.constant 0 : index
    %37 = vector.load %arg8[%c0_26, %c0_27, %c0_28, %c0_29] : memref<2x2x1x16xf32, #tpu.memory_space<vmem>>, vector<1x1x1x16xf32>
    %38 = vector.shape_cast %37 : vector<1x1x1x16xf32> to vector<1x16xf32>
    %39 = vector.broadcast %38 : vector<1x16xf32> to vector<16x16xf32>
    %40 = arith.addf %36, %39 : vector<16x16xf32>
    %c0_30 = arith.constant 0 : index
    %c0_31 = arith.constant 0 : index
    %c0_32 = arith.constant 0 : index
    %c0_33 = arith.constant 0 : index
    %41 = vector.load %arg9[%c0_30, %c0_31, %c0_32, %c0_33] : memref<2x2x32x16xf32, #tpu.memory_space<vmem>>, vector<1x1x32x16xf32>
    %42 = vector.shape_cast %41 : vector<1x1x32x16xf32> to vector<32x16xf32>
    %cst_34 = arith.constant dense<0.000000e+00> : vector<16x16xf32>
    %43 = tpu.matmul %24, %42, %cst_34 {dimension_numbers = #tpu.dot_dimension_numbers<[1], [0], [0], [1], [0, 0, 1, 1], [], []>} : vector<16x32xf32>, vector<32x16xf32>, vector<16x16xf32> -> vector<16x16xf32>
    %c0_35 = arith.constant 0 : index
    %c0_36 = arith.constant 0 : index
    %c0_37 = arith.constant 0 : index
    %c0_38 = arith.constant 0 : index
    %44 = vector.load %arg10[%c0_35, %c0_36, %c0_37, %c0_38] : memref<2x2x1x16xf32, #tpu.memory_space<vmem>>, vector<1x1x1x16xf32>
    %45 = vector.shape_cast %44 : vector<1x1x1x16xf32> to vector<1x16xf32>
    %46 = vector.broadcast %45 : vector<1x16xf32> to vector<16x16xf32>
    %47 = arith.addf %43, %46 : vector<16x16xf32>
    %48 = tpu.transpose %40, [1, 0] : vector<16x16xf32> -> vector<16x16xf32>
    %cst_39 = arith.constant dense<0.000000e+00> : vector<16x16xf32>
    %49 = tpu.matmul %33, %48, %cst_39 {dimension_numbers = #tpu.dot_dimension_numbers<[1], [0], [0], [1], [0, 0, 1, 1], [], []>} : vector<16x16xf32>, vector<16x16xf32>, vector<16x16xf32> -> vector<16x16xf32>
    %cst_40 = arith.constant 2.500000e-01 : f32
    %50 = vector.broadcast %cst_40 : f32 to vector<16x16xf32>
    %51 = arith.mulf %49, %50 : vector<16x16xf32>
    %52 = arith.addf %51, %25 : vector<16x16xf32>
    %cst_41 = arith.constant dense<0xFF800000> : vector<16xf32>
    %53 = vector.multi_reduction <maximumf>, %52, %cst_41 [1] : vector<16x16xf32> to vector<16xf32>
    %54 = vector.shape_cast %53 : vector<16xf32> to vector<16x1xf32>
    %55 = vector.broadcast %54 : vector<16x1xf32> to vector<16x16xf32>
    %56 = arith.subf %52, %55 : vector<16x16xf32>
    %57 = math.exp %56 : vector<16x16xf32>
    %cst_42 = arith.constant dense<0.000000e+00> : vector<16xf32>
    %58 = vector.multi_reduction <add>, %57, %cst_42 [1] : vector<16x16xf32> to vector<16xf32>
    %59 = vector.shape_cast %58 : vector<16xf32> to vector<16x1xf32>
    %60 = vector.broadcast %59 : vector<16x1xf32> to vector<16x16xf32>
    %61 = arith.divf %57, %60 : vector<16x16xf32>
    %cst_43 = arith.constant dense<0.000000e+00> : vector<16x16xf32>
    %62 = tpu.matmul %61, %47, %cst_43 {dimension_numbers = #tpu.dot_dimension_numbers<[1], [0], [0], [1], [0, 0, 1, 1], [], []>} : vector<16x16xf32>, vector<16x16xf32>, vector<16x16xf32> -> vector<16x16xf32>
    %c0_44 = arith.constant 0 : index
    %c0_45 = arith.constant 0 : index
    %c0_46 = arith.constant 0 : index
    %c0_47 = arith.constant 0 : index
    %63 = vector.load %arg11[%c0_44, %c0_45, %c0_46, %c0_47] : memref<2x2x16x32xf32, #tpu.memory_space<vmem>>, vector<1x1x16x32xf32>
    %64 = vector.shape_cast %63 : vector<1x1x16x32xf32> to vector<16x32xf32>
    %cst_48 = arith.constant dense<0.000000e+00> : vector<16x32xf32>
    %65 = tpu.matmul %62, %64, %cst_48 {dimension_numbers = #tpu.dot_dimension_numbers<[1], [0], [0], [1], [0, 0, 1, 1], [], []>} : vector<16x16xf32>, vector<16x32xf32>, vector<16x32xf32> -> vector<16x32xf32>
    %66 = arith.addf %26, %65 : vector<16x32xf32>
    %c0_49 = arith.constant 0 : index
    %c1 = arith.constant 1 : index
    %c0_50 = arith.constant 0 : index
    %c0_51 = arith.constant 0 : index
    %67 = vector.load %arg5[%c0_49, %c1, %c0_50, %c0_51] : memref<2x2x32x16xf32, #tpu.memory_space<vmem>>, vector<1x1x32x16xf32>
    %68 = vector.shape_cast %67 : vector<1x1x32x16xf32> to vector<32x16xf32>
    %cst_52 = arith.constant dense<0.000000e+00> : vector<16x16xf32>
    %69 = tpu.matmul %24, %68, %cst_52 {dimension_numbers = #tpu.dot_dimension_numbers<[1], [0], [0], [1], [0, 0, 1, 1], [], []>} : vector<16x32xf32>, vector<32x16xf32>, vector<16x16xf32> -> vector<16x16xf32>
    %c0_53 = arith.constant 0 : index
    %c1_54 = arith.constant 1 : index
    %c0_55 = arith.constant 0 : index
    %c0_56 = arith.constant 0 : index
    %70 = vector.load %arg6[%c0_53, %c1_54, %c0_55, %c0_56] : memref<2x2x1x16xf32, #tpu.memory_space<vmem>>, vector<1x1x1x16xf32>
    %71 = vector.shape_cast %70 : vector<1x1x1x16xf32> to vector<1x16xf32>
    %72 = vector.broadcast %71 : vector<1x16xf32> to vector<16x16xf32>
    %73 = arith.addf %69, %72 : vector<16x16xf32>
    %c0_57 = arith.constant 0 : index
    %c1_58 = arith.constant 1 : index
    %c0_59 = arith.constant 0 : index
    %c0_60 = arith.constant 0 : index
    %74 = vector.load %arg7[%c0_57, %c1_58, %c0_59, %c0_60] : memref<2x2x32x16xf32, #tpu.memory_space<vmem>>, vector<1x1x32x16xf32>
    %75 = vector.shape_cast %74 : vector<1x1x32x16xf32> to vector<32x16xf32>
    %cst_61 = arith.constant dense<0.000000e+00> : vector<16x16xf32>
    %76 = tpu.matmul %24, %75, %cst_61 {dimension_numbers = #tpu.dot_dimension_numbers<[1], [0], [0], [1], [0, 0, 1, 1], [], []>} : vector<16x32xf32>, vector<32x16xf32>, vector<16x16xf32> -> vector<16x16xf32>
    %c0_62 = arith.constant 0 : index
    %c1_63 = arith.constant 1 : index
    %c0_64 = arith.constant 0 : index
    %c0_65 = arith.constant 0 : index
    %77 = vector.load %arg8[%c0_62, %c1_63, %c0_64, %c0_65] : memref<2x2x1x16xf32, #tpu.memory_space<vmem>>, vector<1x1x1x16xf32>
    %78 = vector.shape_cast %77 : vector<1x1x1x16xf32> to vector<1x16xf32>
    %79 = vector.broadcast %78 : vector<1x16xf32> to vector<16x16xf32>
    %80 = arith.addf %76, %79 : vector<16x16xf32>
    %c0_66 = arith.constant 0 : index
    %c1_67 = arith.constant 1 : index
    %c0_68 = arith.constant 0 : index
    %c0_69 = arith.constant 0 : index
    %81 = vector.load %arg9[%c0_66, %c1_67, %c0_68, %c0_69] : memref<2x2x32x16xf32, #tpu.memory_space<vmem>>, vector<1x1x32x16xf32>
    %82 = vector.shape_cast %81 : vector<1x1x32x16xf32> to vector<32x16xf32>
    %cst_70 = arith.constant dense<0.000000e+00> : vector<16x16xf32>
    %83 = tpu.matmul %24, %82, %cst_70 {dimension_numbers = #tpu.dot_dimension_numbers<[1], [0], [0], [1], [0, 0, 1, 1], [], []>} : vector<16x32xf32>, vector<32x16xf32>, vector<16x16xf32> -> vector<16x16xf32>
    %c0_71 = arith.constant 0 : index
    %c1_72 = arith.constant 1 : index
    %c0_73 = arith.constant 0 : index
    %c0_74 = arith.constant 0 : index
    %84 = vector.load %arg10[%c0_71, %c1_72, %c0_73, %c0_74] : memref<2x2x1x16xf32, #tpu.memory_space<vmem>>, vector<1x1x1x16xf32>
    %85 = vector.shape_cast %84 : vector<1x1x1x16xf32> to vector<1x16xf32>
    %86 = vector.broadcast %85 : vector<1x16xf32> to vector<16x16xf32>
    %87 = arith.addf %83, %86 : vector<16x16xf32>
    %88 = tpu.transpose %80, [1, 0] : vector<16x16xf32> -> vector<16x16xf32>
    %cst_75 = arith.constant dense<0.000000e+00> : vector<16x16xf32>
    %89 = tpu.matmul %73, %88, %cst_75 {dimension_numbers = #tpu.dot_dimension_numbers<[1], [0], [0], [1], [0, 0, 1, 1], [], []>} : vector<16x16xf32>, vector<16x16xf32>, vector<16x16xf32> -> vector<16x16xf32>
    %cst_76 = arith.constant 2.500000e-01 : f32
    %90 = vector.broadcast %cst_76 : f32 to vector<16x16xf32>
    %91 = arith.mulf %89, %90 : vector<16x16xf32>
    %92 = arith.addf %91, %25 : vector<16x16xf32>
    %cst_77 = arith.constant dense<0xFF800000> : vector<16xf32>
    %93 = vector.multi_reduction <maximumf>, %92, %cst_77 [1] : vector<16x16xf32> to vector<16xf32>
    %94 = vector.shape_cast %93 : vector<16xf32> to vector<16x1xf32>
    %95 = vector.broadcast %94 : vector<16x1xf32> to vector<16x16xf32>
    %96 = arith.subf %92, %95 : vector<16x16xf32>
    %97 = math.exp %96 : vector<16x16xf32>
    %cst_78 = arith.constant dense<0.000000e+00> : vector<16xf32>
    %98 = vector.multi_reduction <add>, %97, %cst_78 [1] : vector<16x16xf32> to vector<16xf32>
    %99 = vector.shape_cast %98 : vector<16xf32> to vector<16x1xf32>
    %100 = vector.broadcast %99 : vector<16x1xf32> to vector<16x16xf32>
    %101 = arith.divf %97, %100 : vector<16x16xf32>
    %cst_79 = arith.constant dense<0.000000e+00> : vector<16x16xf32>
    %102 = tpu.matmul %101, %87, %cst_79 {dimension_numbers = #tpu.dot_dimension_numbers<[1], [0], [0], [1], [0, 0, 1, 1], [], []>} : vector<16x16xf32>, vector<16x16xf32>, vector<16x16xf32> -> vector<16x16xf32>
    %c0_80 = arith.constant 0 : index
    %c1_81 = arith.constant 1 : index
    %c0_82 = arith.constant 0 : index
    %c0_83 = arith.constant 0 : index
    %103 = vector.load %arg11[%c0_80, %c1_81, %c0_82, %c0_83] : memref<2x2x16x32xf32, #tpu.memory_space<vmem>>, vector<1x1x16x32xf32>
    %104 = vector.shape_cast %103 : vector<1x1x16x32xf32> to vector<16x32xf32>
    %cst_84 = arith.constant dense<0.000000e+00> : vector<16x32xf32>
    %105 = tpu.matmul %102, %104, %cst_84 {dimension_numbers = #tpu.dot_dimension_numbers<[1], [0], [0], [1], [0, 0, 1, 1], [], []>} : vector<16x16xf32>, vector<16x32xf32>, vector<16x32xf32> -> vector<16x32xf32>
    %106 = arith.addf %66, %105 : vector<16x32xf32>
    %107 = arith.addf %24, %106 : vector<16x32xf32>
    %c0_85 = arith.constant 0 : index
    %c0_86 = arith.constant 0 : index
    %c0_87 = arith.constant 0 : index
    %108 = vector.load %arg12[%c0_85, %c0_86, %c0_87] : memref<2x1x32xf32, #tpu.memory_space<vmem>>, vector<1x1x32xf32>
    %109 = vector.shape_cast %108 : vector<1x1x32xf32> to vector<1x32xf32>
    %110 = vector.broadcast %109 : vector<1x32xf32> to vector<16x32xf32>
    %111 = arith.addf %107, %110 : vector<16x32xf32>
    %c0_88 = arith.constant 0 : index
    %c0_89 = arith.constant 0 : index
    %c0_90 = arith.constant 0 : index
    %112 = vector.load %arg13[%c0_88, %c0_89, %c0_90] : memref<2x1x32xf32, #tpu.memory_space<vmem>>, vector<1x1x32xf32>
    %113 = vector.shape_cast %112 : vector<1x1x32xf32> to vector<1x32xf32>
    %c0_91 = arith.constant 0 : index
    %c0_92 = arith.constant 0 : index
    %c0_93 = arith.constant 0 : index
    %114 = vector.load %arg14[%c0_91, %c0_92, %c0_93] : memref<2x1x32xf32, #tpu.memory_space<vmem>>, vector<1x1x32xf32>
    %115 = vector.shape_cast %114 : vector<1x1x32xf32> to vector<1x32xf32>
    %cst_94 = arith.constant dense<0.000000e+00> : vector<16xf32>
    %116 = vector.multi_reduction <add>, %111, %cst_94 [1] : vector<16x32xf32> to vector<16xf32>
    %117 = vector.shape_cast %116 : vector<16xf32> to vector<16x1xf32>
    %cst_95 = arith.constant 3.200000e+01 : f32
    %118 = vector.broadcast %cst_95 : f32 to vector<16x1xf32>
    %119 = arith.divf %117, %118 : vector<16x1xf32>
    %120 = vector.broadcast %119 : vector<16x1xf32> to vector<16x32xf32>
    %121 = arith.subf %111, %120 : vector<16x32xf32>
    %122 = arith.mulf %121, %121 : vector<16x32xf32>
    %cst_96 = arith.constant dense<0.000000e+00> : vector<16xf32>
    %123 = vector.multi_reduction <add>, %122, %cst_96 [1] : vector<16x32xf32> to vector<16xf32>
    %124 = vector.shape_cast %123 : vector<16xf32> to vector<16x1xf32>
    %cst_97 = arith.constant 3.200000e+01 : f32
    %125 = vector.broadcast %cst_97 : f32 to vector<16x1xf32>
    %126 = arith.divf %124, %125 : vector<16x1xf32>
    %127 = vector.broadcast %119 : vector<16x1xf32> to vector<16x32xf32>
    %128 = arith.subf %111, %127 : vector<16x32xf32>
    %cst_98 = arith.constant 9.99999996E-13 : f32
    %129 = vector.broadcast %cst_98 : f32 to vector<16x1xf32>
    %130 = arith.addf %126, %129 : vector<16x1xf32>
    %131 = math.rsqrt %130 : vector<16x1xf32>
    %132 = vector.broadcast %131 : vector<16x1xf32> to vector<16x32xf32>
    %133 = arith.mulf %128, %132 : vector<16x32xf32>
    %134 = vector.broadcast %113 : vector<1x32xf32> to vector<16x32xf32>
    %135 = arith.mulf %133, %134 : vector<16x32xf32>
    %136 = vector.broadcast %115 : vector<1x32xf32> to vector<16x32xf32>
    %137 = arith.addf %135, %136 : vector<16x32xf32>
    %c0_99 = arith.constant 0 : index
    %c0_100 = arith.constant 0 : index
    %c0_101 = arith.constant 0 : index
    %138 = vector.load %arg15[%c0_99, %c0_100, %c0_101] : memref<2x32x128xf32, #tpu.memory_space<vmem>>, vector<1x32x128xf32>
    %139 = vector.shape_cast %138 : vector<1x32x128xf32> to vector<32x128xf32>
    %cst_102 = arith.constant dense<0.000000e+00> : vector<16x128xf32>
    %140 = tpu.matmul %137, %139, %cst_102 {dimension_numbers = #tpu.dot_dimension_numbers<[1], [0], [0], [1], [0, 0, 1, 1], [], []>} : vector<16x32xf32>, vector<32x128xf32>, vector<16x128xf32> -> vector<16x128xf32>
    %c0_103 = arith.constant 0 : index
    %c0_104 = arith.constant 0 : index
    %c0_105 = arith.constant 0 : index
    %141 = vector.load %arg16[%c0_103, %c0_104, %c0_105] : memref<2x1x128xf32, #tpu.memory_space<vmem>>, vector<1x1x128xf32>
    %142 = vector.shape_cast %141 : vector<1x1x128xf32> to vector<1x128xf32>
    %143 = vector.broadcast %142 : vector<1x128xf32> to vector<16x128xf32>
    %144 = arith.addf %140, %143 : vector<16x128xf32>
    %cst_106 = arith.constant 5.000000e-01 : f32
    %145 = vector.broadcast %cst_106 : f32 to vector<16x128xf32>
    %146 = arith.mulf %145, %144 : vector<16x128xf32>
    %cst_107 = arith.constant 4.471500e-02 : f32
    %147 = vector.broadcast %cst_107 : f32 to vector<16x128xf32>
    %148 = arith.mulf %147, %144 : vector<16x128xf32>
    %149 = arith.mulf %148, %144 : vector<16x128xf32>
    %150 = arith.mulf %149, %144 : vector<16x128xf32>
    %151 = arith.addf %144, %150 : vector<16x128xf32>
    %cst_108 = arith.constant 0.797884583 : f32
    %152 = vector.broadcast %cst_108 : f32 to vector<16x128xf32>
    %153 = arith.mulf %152, %151 : vector<16x128xf32>
    %154 = math.tanh %153 : vector<16x128xf32>
    %cst_109 = arith.constant 1.000000e+00 : f32
    %155 = vector.broadcast %cst_109 : f32 to vector<16x128xf32>
    %156 = arith.addf %155, %154 : vector<16x128xf32>
    %157 = arith.mulf %146, %156 : vector<16x128xf32>
    %c0_110 = arith.constant 0 : index
    %c0_111 = arith.constant 0 : index
    %c0_112 = arith.constant 0 : index
    %158 = vector.load %arg17[%c0_110, %c0_111, %c0_112] : memref<2x128x32xf32, #tpu.memory_space<vmem>>, vector<1x128x32xf32>
    %159 = vector.shape_cast %158 : vector<1x128x32xf32> to vector<128x32xf32>
    %cst_113 = arith.constant dense<0.000000e+00> : vector<16x32xf32>
    %160 = tpu.matmul %157, %159, %cst_113 {dimension_numbers = #tpu.dot_dimension_numbers<[1], [0], [0], [1], [0, 0, 1, 1], [], []>} : vector<16x128xf32>, vector<128x32xf32>, vector<16x32xf32> -> vector<16x32xf32>
    %c0_114 = arith.constant 0 : index
    %c0_115 = arith.constant 0 : index
    %c0_116 = arith.constant 0 : index
    %161 = vector.load %arg18[%c0_114, %c0_115, %c0_116] : memref<2x1x32xf32, #tpu.memory_space<vmem>>, vector<1x1x32xf32>
    %162 = vector.shape_cast %161 : vector<1x1x32xf32> to vector<1x32xf32>
    %163 = vector.broadcast %162 : vector<1x32xf32> to vector<16x32xf32>
    %164 = arith.addf %160, %163 : vector<16x32xf32>
    %165 = arith.addf %137, %164 : vector<16x32xf32>
    %c0_117 = arith.constant 0 : index
    %c0_118 = arith.constant 0 : index
    %c0_119 = arith.constant 0 : index
    %166 = vector.load %arg19[%c0_117, %c0_118, %c0_119] : memref<2x1x32xf32, #tpu.memory_space<vmem>>, vector<1x1x32xf32>
    %167 = vector.shape_cast %166 : vector<1x1x32xf32> to vector<1x32xf32>
    %c0_120 = arith.constant 0 : index
    %c0_121 = arith.constant 0 : index
    %c0_122 = arith.constant 0 : index
    %168 = vector.load %arg20[%c0_120, %c0_121, %c0_122] : memref<2x1x32xf32, #tpu.memory_space<vmem>>, vector<1x1x32xf32>
    %169 = vector.shape_cast %168 : vector<1x1x32xf32> to vector<1x32xf32>
    %cst_123 = arith.constant dense<0.000000e+00> : vector<16xf32>
    %170 = vector.multi_reduction <add>, %165, %cst_123 [1] : vector<16x32xf32> to vector<16xf32>
    %171 = vector.shape_cast %170 : vector<16xf32> to vector<16x1xf32>
    %cst_124 = arith.constant 3.200000e+01 : f32
    %172 = vector.broadcast %cst_124 : f32 to vector<16x1xf32>
    %173 = arith.divf %171, %172 : vector<16x1xf32>
    %174 = vector.broadcast %173 : vector<16x1xf32> to vector<16x32xf32>
    %175 = arith.subf %165, %174 : vector<16x32xf32>
    %176 = arith.mulf %175, %175 : vector<16x32xf32>
    %cst_125 = arith.constant dense<0.000000e+00> : vector<16xf32>
    %177 = vector.multi_reduction <add>, %176, %cst_125 [1] : vector<16x32xf32> to vector<16xf32>
    %178 = vector.shape_cast %177 : vector<16xf32> to vector<16x1xf32>
    %cst_126 = arith.constant 3.200000e+01 : f32
    %179 = vector.broadcast %cst_126 : f32 to vector<16x1xf32>
    %180 = arith.divf %178, %179 : vector<16x1xf32>
    %181 = vector.broadcast %173 : vector<16x1xf32> to vector<16x32xf32>
    %182 = arith.subf %165, %181 : vector<16x32xf32>
    %cst_127 = arith.constant 9.99999996E-13 : f32
    %183 = vector.broadcast %cst_127 : f32 to vector<16x1xf32>
    %184 = arith.addf %180, %183 : vector<16x1xf32>
    %185 = math.rsqrt %184 : vector<16x1xf32>
    %186 = vector.broadcast %185 : vector<16x1xf32> to vector<16x32xf32>
    %187 = arith.mulf %182, %186 : vector<16x32xf32>
    %188 = vector.broadcast %167 : vector<1x32xf32> to vector<16x32xf32>
    %189 = arith.mulf %187, %188 : vector<16x32xf32>
    %190 = vector.broadcast %169 : vector<1x32xf32> to vector<16x32xf32>
    %191 = arith.addf %189, %190 : vector<16x32xf32>
    %cst_128 = arith.constant 0.000000e+00 : f32
    %192 = vector.broadcast %cst_128 : f32 to vector<16x32xf32>
    %c1_129 = arith.constant 1 : index
    %c0_130 = arith.constant 0 : index
    %c0_131 = arith.constant 0 : index
    %c0_132 = arith.constant 0 : index
    %193 = vector.load %arg5[%c1_129, %c0_130, %c0_131, %c0_132] : memref<2x2x32x16xf32, #tpu.memory_space<vmem>>, vector<1x1x32x16xf32>
    %194 = vector.shape_cast %193 : vector<1x1x32x16xf32> to vector<32x16xf32>
    %cst_133 = arith.constant dense<0.000000e+00> : vector<16x16xf32>
    %195 = tpu.matmul %191, %194, %cst_133 {dimension_numbers = #tpu.dot_dimension_numbers<[1], [0], [0], [1], [0, 0, 1, 1], [], []>} : vector<16x32xf32>, vector<32x16xf32>, vector<16x16xf32> -> vector<16x16xf32>
    %c1_134 = arith.constant 1 : index
    %c0_135 = arith.constant 0 : index
    %c0_136 = arith.constant 0 : index
    %c0_137 = arith.constant 0 : index
    %196 = vector.load %arg6[%c1_134, %c0_135, %c0_136, %c0_137] : memref<2x2x1x16xf32, #tpu.memory_space<vmem>>, vector<1x1x1x16xf32>
    %197 = vector.shape_cast %196 : vector<1x1x1x16xf32> to vector<1x16xf32>
    %198 = vector.broadcast %197 : vector<1x16xf32> to vector<16x16xf32>
    %199 = arith.addf %195, %198 : vector<16x16xf32>
    %c1_138 = arith.constant 1 : index
    %c0_139 = arith.constant 0 : index
    %c0_140 = arith.constant 0 : index
    %c0_141 = arith.constant 0 : index
    %200 = vector.load %arg7[%c1_138, %c0_139, %c0_140, %c0_141] : memref<2x2x32x16xf32, #tpu.memory_space<vmem>>, vector<1x1x32x16xf32>
    %201 = vector.shape_cast %200 : vector<1x1x32x16xf32> to vector<32x16xf32>
    %cst_142 = arith.constant dense<0.000000e+00> : vector<16x16xf32>
    %202 = tpu.matmul %191, %201, %cst_142 {dimension_numbers = #tpu.dot_dimension_numbers<[1], [0], [0], [1], [0, 0, 1, 1], [], []>} : vector<16x32xf32>, vector<32x16xf32>, vector<16x16xf32> -> vector<16x16xf32>
    %c1_143 = arith.constant 1 : index
    %c0_144 = arith.constant 0 : index
    %c0_145 = arith.constant 0 : index
    %c0_146 = arith.constant 0 : index
    %203 = vector.load %arg8[%c1_143, %c0_144, %c0_145, %c0_146] : memref<2x2x1x16xf32, #tpu.memory_space<vmem>>, vector<1x1x1x16xf32>
    %204 = vector.shape_cast %203 : vector<1x1x1x16xf32> to vector<1x16xf32>
    %205 = vector.broadcast %204 : vector<1x16xf32> to vector<16x16xf32>
    %206 = arith.addf %202, %205 : vector<16x16xf32>
    %c1_147 = arith.constant 1 : index
    %c0_148 = arith.constant 0 : index
    %c0_149 = arith.constant 0 : index
    %c0_150 = arith.constant 0 : index
    %207 = vector.load %arg9[%c1_147, %c0_148, %c0_149, %c0_150] : memref<2x2x32x16xf32, #tpu.memory_space<vmem>>, vector<1x1x32x16xf32>
    %208 = vector.shape_cast %207 : vector<1x1x32x16xf32> to vector<32x16xf32>
    %cst_151 = arith.constant dense<0.000000e+00> : vector<16x16xf32>
    %209 = tpu.matmul %191, %208, %cst_151 {dimension_numbers = #tpu.dot_dimension_numbers<[1], [0], [0], [1], [0, 0, 1, 1], [], []>} : vector<16x32xf32>, vector<32x16xf32>, vector<16x16xf32> -> vector<16x16xf32>
    %c1_152 = arith.constant 1 : index
    %c0_153 = arith.constant 0 : index
    %c0_154 = arith.constant 0 : index
    %c0_155 = arith.constant 0 : index
    %210 = vector.load %arg10[%c1_152, %c0_153, %c0_154, %c0_155] : memref<2x2x1x16xf32, #tpu.memory_space<vmem>>, vector<1x1x1x16xf32>
    %211 = vector.shape_cast %210 : vector<1x1x1x16xf32> to vector<1x16xf32>
    %212 = vector.broadcast %211 : vector<1x16xf32> to vector<16x16xf32>
    %213 = arith.addf %209, %212 : vector<16x16xf32>
    %214 = tpu.transpose %206, [1, 0] : vector<16x16xf32> -> vector<16x16xf32>
    %cst_156 = arith.constant dense<0.000000e+00> : vector<16x16xf32>
    %215 = tpu.matmul %199, %214, %cst_156 {dimension_numbers = #tpu.dot_dimension_numbers<[1], [0], [0], [1], [0, 0, 1, 1], [], []>} : vector<16x16xf32>, vector<16x16xf32>, vector<16x16xf32> -> vector<16x16xf32>
    %cst_157 = arith.constant 2.500000e-01 : f32
    %216 = vector.broadcast %cst_157 : f32 to vector<16x16xf32>
    %217 = arith.mulf %215, %216 : vector<16x16xf32>
    %218 = arith.addf %217, %25 : vector<16x16xf32>
    %cst_158 = arith.constant dense<0xFF800000> : vector<16xf32>
    %219 = vector.multi_reduction <maximumf>, %218, %cst_158 [1] : vector<16x16xf32> to vector<16xf32>
    %220 = vector.shape_cast %219 : vector<16xf32> to vector<16x1xf32>
    %221 = vector.broadcast %220 : vector<16x1xf32> to vector<16x16xf32>
    %222 = arith.subf %218, %221 : vector<16x16xf32>
    %223 = math.exp %222 : vector<16x16xf32>
    %cst_159 = arith.constant dense<0.000000e+00> : vector<16xf32>
    %224 = vector.multi_reduction <add>, %223, %cst_159 [1] : vector<16x16xf32> to vector<16xf32>
    %225 = vector.shape_cast %224 : vector<16xf32> to vector<16x1xf32>
    %226 = vector.broadcast %225 : vector<16x1xf32> to vector<16x16xf32>
    %227 = arith.divf %223, %226 : vector<16x16xf32>
    %cst_160 = arith.constant dense<0.000000e+00> : vector<16x16xf32>
    %228 = tpu.matmul %227, %213, %cst_160 {dimension_numbers = #tpu.dot_dimension_numbers<[1], [0], [0], [1], [0, 0, 1, 1], [], []>} : vector<16x16xf32>, vector<16x16xf32>, vector<16x16xf32> -> vector<16x16xf32>
    %c1_161 = arith.constant 1 : index
    %c0_162 = arith.constant 0 : index
    %c0_163 = arith.constant 0 : index
    %c0_164 = arith.constant 0 : index
    %229 = vector.load %arg11[%c1_161, %c0_162, %c0_163, %c0_164] : memref<2x2x16x32xf32, #tpu.memory_space<vmem>>, vector<1x1x16x32xf32>
    %230 = vector.shape_cast %229 : vector<1x1x16x32xf32> to vector<16x32xf32>
    %cst_165 = arith.constant dense<0.000000e+00> : vector<16x32xf32>
    %231 = tpu.matmul %228, %230, %cst_165 {dimension_numbers = #tpu.dot_dimension_numbers<[1], [0], [0], [1], [0, 0, 1, 1], [], []>} : vector<16x16xf32>, vector<16x32xf32>, vector<16x32xf32> -> vector<16x32xf32>
    %232 = arith.addf %192, %231 : vector<16x32xf32>
    %c1_166 = arith.constant 1 : index
    %c1_167 = arith.constant 1 : index
    %c0_168 = arith.constant 0 : index
    %c0_169 = arith.constant 0 : index
    %233 = vector.load %arg5[%c1_166, %c1_167, %c0_168, %c0_169] : memref<2x2x32x16xf32, #tpu.memory_space<vmem>>, vector<1x1x32x16xf32>
    %234 = vector.shape_cast %233 : vector<1x1x32x16xf32> to vector<32x16xf32>
    %cst_170 = arith.constant dense<0.000000e+00> : vector<16x16xf32>
    %235 = tpu.matmul %191, %234, %cst_170 {dimension_numbers = #tpu.dot_dimension_numbers<[1], [0], [0], [1], [0, 0, 1, 1], [], []>} : vector<16x32xf32>, vector<32x16xf32>, vector<16x16xf32> -> vector<16x16xf32>
    %c1_171 = arith.constant 1 : index
    %c1_172 = arith.constant 1 : index
    %c0_173 = arith.constant 0 : index
    %c0_174 = arith.constant 0 : index
    %236 = vector.load %arg6[%c1_171, %c1_172, %c0_173, %c0_174] : memref<2x2x1x16xf32, #tpu.memory_space<vmem>>, vector<1x1x1x16xf32>
    %237 = vector.shape_cast %236 : vector<1x1x1x16xf32> to vector<1x16xf32>
    %238 = vector.broadcast %237 : vector<1x16xf32> to vector<16x16xf32>
    %239 = arith.addf %235, %238 : vector<16x16xf32>
    %c1_175 = arith.constant 1 : index
    %c1_176 = arith.constant 1 : index
    %c0_177 = arith.constant 0 : index
    %c0_178 = arith.constant 0 : index
    %240 = vector.load %arg7[%c1_175, %c1_176, %c0_177, %c0_178] : memref<2x2x32x16xf32, #tpu.memory_space<vmem>>, vector<1x1x32x16xf32>
    %241 = vector.shape_cast %240 : vector<1x1x32x16xf32> to vector<32x16xf32>
    %cst_179 = arith.constant dense<0.000000e+00> : vector<16x16xf32>
    %242 = tpu.matmul %191, %241, %cst_179 {dimension_numbers = #tpu.dot_dimension_numbers<[1], [0], [0], [1], [0, 0, 1, 1], [], []>} : vector<16x32xf32>, vector<32x16xf32>, vector<16x16xf32> -> vector<16x16xf32>
    %c1_180 = arith.constant 1 : index
    %c1_181 = arith.constant 1 : index
    %c0_182 = arith.constant 0 : index
    %c0_183 = arith.constant 0 : index
    %243 = vector.load %arg8[%c1_180, %c1_181, %c0_182, %c0_183] : memref<2x2x1x16xf32, #tpu.memory_space<vmem>>, vector<1x1x1x16xf32>
    %244 = vector.shape_cast %243 : vector<1x1x1x16xf32> to vector<1x16xf32>
    %245 = vector.broadcast %244 : vector<1x16xf32> to vector<16x16xf32>
    %246 = arith.addf %242, %245 : vector<16x16xf32>
    %c1_184 = arith.constant 1 : index
    %c1_185 = arith.constant 1 : index
    %c0_186 = arith.constant 0 : index
    %c0_187 = arith.constant 0 : index
    %247 = vector.load %arg9[%c1_184, %c1_185, %c0_186, %c0_187] : memref<2x2x32x16xf32, #tpu.memory_space<vmem>>, vector<1x1x32x16xf32>
    %248 = vector.shape_cast %247 : vector<1x1x32x16xf32> to vector<32x16xf32>
    %cst_188 = arith.constant dense<0.000000e+00> : vector<16x16xf32>
    %249 = tpu.matmul %191, %248, %cst_188 {dimension_numbers = #tpu.dot_dimension_numbers<[1], [0], [0], [1], [0, 0, 1, 1], [], []>} : vector<16x32xf32>, vector<32x16xf32>, vector<16x16xf32> -> vector<16x16xf32>
    %c1_189 = arith.constant 1 : index
    %c1_190 = arith.constant 1 : index
    %c0_191 = arith.constant 0 : index
    %c0_192 = arith.constant 0 : index
    %250 = vector.load %arg10[%c1_189, %c1_190, %c0_191, %c0_192] : memref<2x2x1x16xf32, #tpu.memory_space<vmem>>, vector<1x1x1x16xf32>
    %251 = vector.shape_cast %250 : vector<1x1x1x16xf32> to vector<1x16xf32>
    %252 = vector.broadcast %251 : vector<1x16xf32> to vector<16x16xf32>
    %253 = arith.addf %249, %252 : vector<16x16xf32>
    %254 = tpu.transpose %246, [1, 0] : vector<16x16xf32> -> vector<16x16xf32>
    %cst_193 = arith.constant dense<0.000000e+00> : vector<16x16xf32>
    %255 = tpu.matmul %239, %254, %cst_193 {dimension_numbers = #tpu.dot_dimension_numbers<[1], [0], [0], [1], [0, 0, 1, 1], [], []>} : vector<16x16xf32>, vector<16x16xf32>, vector<16x16xf32> -> vector<16x16xf32>
    %cst_194 = arith.constant 2.500000e-01 : f32
    %256 = vector.broadcast %cst_194 : f32 to vector<16x16xf32>
    %257 = arith.mulf %255, %256 : vector<16x16xf32>
    %258 = arith.addf %257, %25 : vector<16x16xf32>
    %cst_195 = arith.constant dense<0xFF800000> : vector<16xf32>
    %259 = vector.multi_reduction <maximumf>, %258, %cst_195 [1] : vector<16x16xf32> to vector<16xf32>
    %260 = vector.shape_cast %259 : vector<16xf32> to vector<16x1xf32>
    %261 = vector.broadcast %260 : vector<16x1xf32> to vector<16x16xf32>
    %262 = arith.subf %258, %261 : vector<16x16xf32>
    %263 = math.exp %262 : vector<16x16xf32>
    %cst_196 = arith.constant dense<0.000000e+00> : vector<16xf32>
    %264 = vector.multi_reduction <add>, %263, %cst_196 [1] : vector<16x16xf32> to vector<16xf32>
    %265 = vector.shape_cast %264 : vector<16xf32> to vector<16x1xf32>
    %266 = vector.broadcast %265 : vector<16x1xf32> to vector<16x16xf32>
    %267 = arith.divf %263, %266 : vector<16x16xf32>
    %cst_197 = arith.constant dense<0.000000e+00> : vector<16x16xf32>
    %268 = tpu.matmul %267, %253, %cst_197 {dimension_numbers = #tpu.dot_dimension_numbers<[1], [0], [0], [1], [0, 0, 1, 1], [], []>} : vector<16x16xf32>, vector<16x16xf32>, vector<16x16xf32> -> vector<16x16xf32>
    %c1_198 = arith.constant 1 : index
    %c1_199 = arith.constant 1 : index
    %c0_200 = arith.constant 0 : index
    %c0_201 = arith.constant 0 : index
    %269 = vector.load %arg11[%c1_198, %c1_199, %c0_200, %c0_201] : memref<2x2x16x32xf32, #tpu.memory_space<vmem>>, vector<1x1x16x32xf32>
    %270 = vector.shape_cast %269 : vector<1x1x16x32xf32> to vector<16x32xf32>
    %cst_202 = arith.constant dense<0.000000e+00> : vector<16x32xf32>
    %271 = tpu.matmul %268, %270, %cst_202 {dimension_numbers = #tpu.dot_dimension_numbers<[1], [0], [0], [1], [0, 0, 1, 1], [], []>} : vector<16x16xf32>, vector<16x32xf32>, vector<16x32xf32> -> vector<16x32xf32>
    %272 = arith.addf %232, %271 : vector<16x32xf32>
    %273 = arith.addf %191, %272 : vector<16x32xf32>
    %c1_203 = arith.constant 1 : index
    %c0_204 = arith.constant 0 : index
    %c0_205 = arith.constant 0 : index
    %274 = vector.load %arg12[%c1_203, %c0_204, %c0_205] : memref<2x1x32xf32, #tpu.memory_space<vmem>>, vector<1x1x32xf32>
    %275 = vector.shape_cast %274 : vector<1x1x32xf32> to vector<1x32xf32>
    %276 = vector.broadcast %275 : vector<1x32xf32> to vector<16x32xf32>
    %277 = arith.addf %273, %276 : vector<16x32xf32>
    %c1_206 = arith.constant 1 : index
    %c0_207 = arith.constant 0 : index
    %c0_208 = arith.constant 0 : index
    %278 = vector.load %arg13[%c1_206, %c0_207, %c0_208] : memref<2x1x32xf32, #tpu.memory_space<vmem>>, vector<1x1x32xf32>
    %279 = vector.shape_cast %278 : vector<1x1x32xf32> to vector<1x32xf32>
    %c1_209 = arith.constant 1 : index
    %c0_210 = arith.constant 0 : index
    %c0_211 = arith.constant 0 : index
    %280 = vector.load %arg14[%c1_209, %c0_210, %c0_211] : memref<2x1x32xf32, #tpu.memory_space<vmem>>, vector<1x1x32xf32>
    %281 = vector.shape_cast %280 : vector<1x1x32xf32> to vector<1x32xf32>
    %cst_212 = arith.constant dense<0.000000e+00> : vector<16xf32>
    %282 = vector.multi_reduction <add>, %277, %cst_212 [1] : vector<16x32xf32> to vector<16xf32>
    %283 = vector.shape_cast %282 : vector<16xf32> to vector<16x1xf32>
    %cst_213 = arith.constant 3.200000e+01 : f32
    %284 = vector.broadcast %cst_213 : f32 to vector<16x1xf32>
    %285 = arith.divf %283, %284 : vector<16x1xf32>
    %286 = vector.broadcast %285 : vector<16x1xf32> to vector<16x32xf32>
    %287 = arith.subf %277, %286 : vector<16x32xf32>
    %288 = arith.mulf %287, %287 : vector<16x32xf32>
    %cst_214 = arith.constant dense<0.000000e+00> : vector<16xf32>
    %289 = vector.multi_reduction <add>, %288, %cst_214 [1] : vector<16x32xf32> to vector<16xf32>
    %290 = vector.shape_cast %289 : vector<16xf32> to vector<16x1xf32>
    %cst_215 = arith.constant 3.200000e+01 : f32
    %291 = vector.broadcast %cst_215 : f32 to vector<16x1xf32>
    %292 = arith.divf %290, %291 : vector<16x1xf32>
    %293 = vector.broadcast %285 : vector<16x1xf32> to vector<16x32xf32>
    %294 = arith.subf %277, %293 : vector<16x32xf32>
    %cst_216 = arith.constant 9.99999996E-13 : f32
    %295 = vector.broadcast %cst_216 : f32 to vector<16x1xf32>
    %296 = arith.addf %292, %295 : vector<16x1xf32>
    %297 = math.rsqrt %296 : vector<16x1xf32>
    %298 = vector.broadcast %297 : vector<16x1xf32> to vector<16x32xf32>
    %299 = arith.mulf %294, %298 : vector<16x32xf32>
    %300 = vector.broadcast %279 : vector<1x32xf32> to vector<16x32xf32>
    %301 = arith.mulf %299, %300 : vector<16x32xf32>
    %302 = vector.broadcast %281 : vector<1x32xf32> to vector<16x32xf32>
    %303 = arith.addf %301, %302 : vector<16x32xf32>
    %c1_217 = arith.constant 1 : index
    %c0_218 = arith.constant 0 : index
    %c0_219 = arith.constant 0 : index
    %304 = vector.load %arg15[%c1_217, %c0_218, %c0_219] : memref<2x32x128xf32, #tpu.memory_space<vmem>>, vector<1x32x128xf32>
    %305 = vector.shape_cast %304 : vector<1x32x128xf32> to vector<32x128xf32>
    %cst_220 = arith.constant dense<0.000000e+00> : vector<16x128xf32>
    %306 = tpu.matmul %303, %305, %cst_220 {dimension_numbers = #tpu.dot_dimension_numbers<[1], [0], [0], [1], [0, 0, 1, 1], [], []>} : vector<16x32xf32>, vector<32x128xf32>, vector<16x128xf32> -> vector<16x128xf32>
    %c1_221 = arith.constant 1 : index
    %c0_222 = arith.constant 0 : index
    %c0_223 = arith.constant 0 : index
    %307 = vector.load %arg16[%c1_221, %c0_222, %c0_223] : memref<2x1x128xf32, #tpu.memory_space<vmem>>, vector<1x1x128xf32>
    %308 = vector.shape_cast %307 : vector<1x1x128xf32> to vector<1x128xf32>
    %309 = vector.broadcast %308 : vector<1x128xf32> to vector<16x128xf32>
    %310 = arith.addf %306, %309 : vector<16x128xf32>
    %cst_224 = arith.constant 5.000000e-01 : f32
    %311 = vector.broadcast %cst_224 : f32 to vector<16x128xf32>
    %312 = arith.mulf %311, %310 : vector<16x128xf32>
    %cst_225 = arith.constant 4.471500e-02 : f32
    %313 = vector.broadcast %cst_225 : f32 to vector<16x128xf32>
    %314 = arith.mulf %313, %310 : vector<16x128xf32>
    %315 = arith.mulf %314, %310 : vector<16x128xf32>
    %316 = arith.mulf %315, %310 : vector<16x128xf32>
    %317 = arith.addf %310, %316 : vector<16x128xf32>
    %cst_226 = arith.constant 0.797884583 : f32
    %318 = vector.broadcast %cst_226 : f32 to vector<16x128xf32>
    %319 = arith.mulf %318, %317 : vector<16x128xf32>
    %320 = math.tanh %319 : vector<16x128xf32>
    %cst_227 = arith.constant 1.000000e+00 : f32
    %321 = vector.broadcast %cst_227 : f32 to vector<16x128xf32>
    %322 = arith.addf %321, %320 : vector<16x128xf32>
    %323 = arith.mulf %312, %322 : vector<16x128xf32>
    %c1_228 = arith.constant 1 : index
    %c0_229 = arith.constant 0 : index
    %c0_230 = arith.constant 0 : index
    %324 = vector.load %arg17[%c1_228, %c0_229, %c0_230] : memref<2x128x32xf32, #tpu.memory_space<vmem>>, vector<1x128x32xf32>
    %325 = vector.shape_cast %324 : vector<1x128x32xf32> to vector<128x32xf32>
    %cst_231 = arith.constant dense<0.000000e+00> : vector<16x32xf32>
    %326 = tpu.matmul %323, %325, %cst_231 {dimension_numbers = #tpu.dot_dimension_numbers<[1], [0], [0], [1], [0, 0, 1, 1], [], []>} : vector<16x128xf32>, vector<128x32xf32>, vector<16x32xf32> -> vector<16x32xf32>
    %c1_232 = arith.constant 1 : index
    %c0_233 = arith.constant 0 : index
    %c0_234 = arith.constant 0 : index
    %327 = vector.load %arg18[%c1_232, %c0_233, %c0_234] : memref<2x1x32xf32, #tpu.memory_space<vmem>>, vector<1x1x32xf32>
    %328 = vector.shape_cast %327 : vector<1x1x32xf32> to vector<1x32xf32>
    %329 = vector.broadcast %328 : vector<1x32xf32> to vector<16x32xf32>
    %330 = arith.addf %326, %329 : vector<16x32xf32>
    %331 = arith.addf %303, %330 : vector<16x32xf32>
    %c1_235 = arith.constant 1 : index
    %c0_236 = arith.constant 0 : index
    %c0_237 = arith.constant 0 : index
    %332 = vector.load %arg19[%c1_235, %c0_236, %c0_237] : memref<2x1x32xf32, #tpu.memory_space<vmem>>, vector<1x1x32xf32>
    %333 = vector.shape_cast %332 : vector<1x1x32xf32> to vector<1x32xf32>
    %c1_238 = arith.constant 1 : index
    %c0_239 = arith.constant 0 : index
    %c0_240 = arith.constant 0 : index
    %334 = vector.load %arg20[%c1_238, %c0_239, %c0_240] : memref<2x1x32xf32, #tpu.memory_space<vmem>>, vector<1x1x32xf32>
    %335 = vector.shape_cast %334 : vector<1x1x32xf32> to vector<1x32xf32>
    %cst_241 = arith.constant dense<0.000000e+00> : vector<16xf32>
    %336 = vector.multi_reduction <add>, %331, %cst_241 [1] : vector<16x32xf32> to vector<16xf32>
    %337 = vector.shape_cast %336 : vector<16xf32> to vector<16x1xf32>
    %cst_242 = arith.constant 3.200000e+01 : f32
    %338 = vector.broadcast %cst_242 : f32 to vector<16x1xf32>
    %339 = arith.divf %337, %338 : vector<16x1xf32>
    %340 = vector.broadcast %339 : vector<16x1xf32> to vector<16x32xf32>
    %341 = arith.subf %331, %340 : vector<16x32xf32>
    %342 = arith.mulf %341, %341 : vector<16x32xf32>
    %cst_243 = arith.constant dense<0.000000e+00> : vector<16xf32>
    %343 = vector.multi_reduction <add>, %342, %cst_243 [1] : vector<16x32xf32> to vector<16xf32>
    %344 = vector.shape_cast %343 : vector<16xf32> to vector<16x1xf32>
    %cst_244 = arith.constant 3.200000e+01 : f32
    %345 = vector.broadcast %cst_244 : f32 to vector<16x1xf32>
    %346 = arith.divf %344, %345 : vector<16x1xf32>
    %347 = vector.broadcast %339 : vector<16x1xf32> to vector<16x32xf32>
    %348 = arith.subf %331, %347 : vector<16x32xf32>
    %cst_245 = arith.constant 9.99999996E-13 : f32
    %349 = vector.broadcast %cst_245 : f32 to vector<16x1xf32>
    %350 = arith.addf %346, %349 : vector<16x1xf32>
    %351 = math.rsqrt %350 : vector<16x1xf32>
    %352 = vector.broadcast %351 : vector<16x1xf32> to vector<16x32xf32>
    %353 = arith.mulf %348, %352 : vector<16x32xf32>
    %354 = vector.broadcast %333 : vector<1x32xf32> to vector<16x32xf32>
    %355 = arith.mulf %353, %354 : vector<16x32xf32>
    %356 = vector.broadcast %335 : vector<1x32xf32> to vector<16x32xf32>
    %357 = arith.addf %355, %356 : vector<16x32xf32>
    %c0_246 = arith.constant 0 : index
    %c0_247 = arith.constant 0 : index
    %358 = vector.load %arg21[%c0_246, %c0_247] : memref<32x128xf32, #tpu.memory_space<vmem>>, vector<32x128xf32>
    %cst_248 = arith.constant dense<0.000000e+00> : vector<16x128xf32>
    %359 = tpu.matmul %357, %358, %cst_248 {dimension_numbers = #tpu.dot_dimension_numbers<[1], [0], [0], [1], [0, 0, 1, 1], [], []>} : vector<16x32xf32>, vector<32x128xf32>, vector<16x128xf32> -> vector<16x128xf32>
    %c0_249 = arith.constant 0 : index
    %c0_250 = arith.constant 0 : index
    %360 = vector.load %arg22[%c0_249, %c0_250] : memref<1x128xf32, #tpu.memory_space<vmem>>, vector<1x128xf32>
    %361 = vector.broadcast %360 : vector<1x128xf32> to vector<16x128xf32>
    %362 = arith.addf %359, %361 : vector<16x128xf32>
    %c0_251 = arith.constant 0 : index
    %c0_252 = arith.constant 0 : index
    %363 = vector.load %arg23[%c0_251, %c0_252] : memref<16x128xf32, #tpu.memory_space<vmem>>, vector<16x128xf32>
    tpu.vector_store %arg23[%c0_251, %c0_252], %362 {strides = array<i32>} : memref<16x128xf32, #tpu.memory_space<vmem>>, vector<16x128xf32>,
    %c0_253 = arith.constant 0 : index
    %c0_254 = arith.constant 0 : index
    %364 = vector.load %arg2[%c0_253, %c0_254] : memref<16x1xi32, #tpu.memory_space<vmem>>, vector<16x1xi32>
    %cst_255 = arith.constant dense<0xFF800000> : vector<16xf32>
    %365 = vector.multi_reduction <maximumf>, %362, %cst_255 [1] : vector<16x128xf32> to vector<16xf32>
    %366 = vector.shape_cast %365 : vector<16xf32> to vector<16x1xf32>
    %367 = vector.broadcast %366 : vector<16x1xf32> to vector<16x128xf32>
    %368 = arith.subf %362, %367 : vector<16x128xf32>
    %369 = math.exp %368 : vector<16x128xf32>
    %cst_256 = arith.constant dense<0.000000e+00> : vector<16xf32>
    %370 = vector.multi_reduction <add>, %369, %cst_256 [1] : vector<16x128xf32> to vector<16xf32>
    %371 = vector.shape_cast %370 : vector<16xf32> to vector<16x1xf32>
    %372 = math.log %371 : vector<16x1xf32>
    %373 = arith.addf %372, %366 : vector<16x1xf32>
    %374 = vector.broadcast %373 : vector<16x1xf32> to vector<16x128xf32>
    %375 = arith.subf %362, %374 : vector<16x128xf32>
    %376 = tpu.iota {dimensions = array<i32: 1>} : vector<16x128xi32>
    %377 = vector.broadcast %364 : vector<16x1xi32> to vector<16x128xi32>
    %378 = arith.cmpi eq, %376, %377 : vector<16x128xi32>
    %379 = arith.extui %378 : vector<16x128xi1> to vector<16x128xi32>
    %380 = arith.sitofp %379 : vector<16x128xi32> to vector<16x128xf32>
    %381 = arith.mulf %380, %375 : vector<16x128xf32>
    %cst_257 = arith.constant dense<0.000000e+00> : vector<16xf32>
    %382 = vector.multi_reduction <add>, %381, %cst_257 [1] : vector<16x128xf32> to vector<16xf32>
    %383 = vector.shape_cast %382 : vector<16xf32> to vector<16x1xf32>
    %cst_258 = arith.constant 0.000000e+00 : f32
    %384 = vector.broadcast %cst_258 : f32 to vector<16x1xf32>
    %385 = arith.subf %384, %383 : vector<16x1xf32>
    %c-100_i32 = arith.constant -100 : i32
    %386 = vector.broadcast %c-100_i32 : i32 to vector<16x1xi32>
    %387 = arith.cmpi ne, %364, %386 : vector<16x1xi32>
    %388 = arith.extui %387 : vector<16x1xi1> to vector<16x1xi32>
    %389 = arith.sitofp %388 : vector<16x1xi32> to vector<16x1xf32>
    %390 = arith.mulf %385, %389 : vector<16x1xf32>
    %391 = vector.shape_cast %390 : vector<16x1xf32> to vector<1x16x1xf32>
    %cst_259 = arith.constant dense<0.000000e+00> : vector<1xf32>
    %392 = vector.multi_reduction <add>, %391, %cst_259 [1, 2] : vector<1x16x1xf32> to vector<1xf32>
    %393 = vector.shape_cast %392 : vector<1xf32> to vector<1x1x1xf32>
    %394 = vector.extract %393[0, 0, 0] : f32 from vector<1x1x1xf32>
    %395 = vector.broadcast %394 : f32 to vector<1x1xf32>
    %c0_260 = arith.constant 0 : index
    %c0_261 = arith.constant 0 : index
    %396 = vector.load %arg24[%c0_260, %c0_261] : memref<1x1xf32, #tpu.memory_space<vmem>>, vector<1x1xf32>
    tpu.vector_store %arg24[%c0_260, %c0_261], %395 {strides = array<i32>} : memref<1x1xf32, #tpu.memory_space<vmem>>, vector<1x1xf32>,
    %397 = vector.shape_cast %389 : vector<16x1xf32> to vector<1x16x1xf32>
    %cst_262 = arith.constant dense<0.000000e+00> : vector<1xf32>
    %398 = vector.multi_reduction <add>, %397, %cst_262 [1, 2] : vector<1x16x1xf32> to vector<1xf32>
    %399 = vector.shape_cast %398 : vector<1xf32> to vector<1x1x1xf32>
    %400 = vector.extract %399[0, 0, 0] : f32 from vector<1x1x1xf32>
    %401 = vector.broadcast %400 : f32 to vector<1x1xf32>
    %c0_263 = arith.constant 0 : index
    %c0_264 = arith.constant 0 : index
    %402 = vector.load %arg25[%c0_263, %c0_264] : memref<1x1xf32, #tpu.memory_space<vmem>>, vector<1x1xf32>
    tpu.vector_store %arg25[%c0_263, %c0_264], %401 {strides = array<i32>} : memref<1x1xf32, #tpu.memory_space<vmem>>, vector<1x1xf32>,
    return
  }
}

</mosaic_0001>

<bundles_post_ra>
// kernel: tpu_custom_call.1
= control target key start
LH: loop header
LB: loop body
LE: loop exit
PB: predicated region body
PF: predicated region fallthrough
CT: control target
= control target key end

     0   :  { %s2854_s0 = inlined_call_operand.vmem [shape: f32[16,32], index: 0, kind: input, shape index: {}]   ;;  %s2855_s1 = inlined_call_operand.vmem [shape: f32[16,16], index: 1, kind: input, shape index: {}]   ;;  %s2856_s2 = inlined_call_operand.vmem [shape: s32[16,1], index: 2, kind: input, shape index: {}]   ;;  %s2857_s3 = inlined_call_operand.vmem [shape: f32[1,32], index: 3, kind: input, shape index: {}]   ;;  %s2858_s4 = inlined_call_operand.vmem [shape: f32[1,32], index: 4, kind: input, shape index: {}]   ;;  %s2859_s5 = inlined_call_operand.vmem [shape: f32[2,2,32,16], index: 5, kind: input, shape index: {}]   ;;  %s2860_s6 = inlined_call_operand.vmem [shape: f32[2,2,1,16], index: 6, kind: input, shape index: {}]   ;;  %s2861_s7 = inlined_call_operand.vmem [shape: f32[2,2,32,16], index: 7, kind: input, shape index: {}]   ;;  %s2862_s8 = inlined_call_operand.vmem [shape: f32[2,2,1,16], index: 8, kind: input, shape index: {}]   ;;  %s2863_s9 = inlined_call_operand.vmem [shape: f32[2,2,32,16], index: 9, kind: input, shape index: {}]   ;;  %s2864_s10 = inlined_call_operand.vmem [shape: f32[2,2,1,16], index: 10, kind: input, shape index: {}]   ;;  %s2865_s11 = inlined_call_operand.vmem [shape: f32[2,2,16,32], index: 11, kind: input, shape index: {}]   ;;  %s2866_s12 = inlined_call_operand.vmem [shape: f32[2,1,32], index: 12, kind: input, shape index: {}]   ;;  %s2867_s13 = inlined_call_operand.vmem [shape: f32[2,1,32], index: 13, kind: input, shape index: {}]   ;;  %s2868_s14 = inlined_call_operand.vmem [shape: f32[2,1,32], index: 14, kind: input, shape index: {}]   ;;  %s2869_s15 = inlined_call_operand.vmem [shape: f32[2,32,128], index: 15, kind: input, shape index: {}]   ;;  %s2870_s16 = inlined_call_operand.vmem [shape: f32[2,1,128], index: 16, kind: input, shape index: {}]   ;;  %s2871_s17 = inlined_call_operand.vmem [shape: f32[2,128,32], index: 17, kind: input, shape index: {}]   ;;  %s2872_s18 = inlined_call_operand.vmem [shape: f32[2,1,32], index: 18, kind: input, shape index: {}]   ;;  %s2873_s19 = inlined_call_operand.vmem [shape: f32[2,1,32], index: 19, kind: input, shape index: {}]   ;;  %s2874_s20 = inlined_call_operand.vmem [shape: f32[2,1,32], index: 20, kind: input, shape index: {}]   ;;  %s2875_s21 = inlined_call_operand.vmem [shape: f32[32,128], index: 21, kind: input, shape index: {}]   ;;  %s2876_s22 = inlined_call_operand.vmem [shape: f32[1,128], index: 22, kind: input, shape index: {}]   ;;  %s2877_s23 = inlined_call_operand.hbm [shape: f32[16,128], index: 23, kind: output, shape index: {0}]   ;;  %s2878_s24 = inlined_call_operand.hbm [shape: f32[1,1], index: 24, kind: output, shape index: {1}]   ;;  %s2879_s25 = inlined_call_operand.hbm [shape: f32[1,1], index: 25, kind: output, shape index: {2}]  }
   0x1   :  { %2888 = sst [smem:[#allocation9_spill]] %s2854_s0 }
   0x2   :  { %2889 = sst [smem:[#allocation10_spill]] %s2855_s1 }
   0x3   :  { %2890 = sst [smem:[#allocation11_spill]] %s2856_s2 }
   0x4   :  { %2891 = sst [smem:[#allocation12_spill]] %s2857_s3 }
   0x5   :  { %2892 = sst [smem:[#allocation13_spill]] %s2858_s4 }
   0x6   :  { %2893 = sst [smem:[#allocation14_spill]] %s2859_s5 }
   0x7   :  { %2894 = sst [smem:[#allocation15_spill]] %s2860_s6 }
   0x8   :  { %2895 = sst [smem:[#allocation16_spill]] %s2861_s7 }
   0x9   :  { %2896 = sst [smem:[#allocation17_spill]] %s2862_s8 }
   0xa   :  { %2897 = sst [smem:[#allocation18_spill]] %s2863_s9 }
   0xb   :  { %2898 = sst [smem:[#allocation19_spill]] %s2879_s25 }
   0xc   :  { %31 = vsyncpa [#allocation3], 0  ;;  %s2899_s6 = sld [smem:[#allocation9_spill]]  ;;  %vm83_vm0 = vcmask 261120  }
  0x12   :  { %v80_v0 = vld [vmem:[%s2899_s6 + $0x8] sm:$0xff]  ;;  %v79_v1 = vld [vmem:[%s2899_s6] sm:$0xff] }
  0x13   :  { %v87_v2 = vsel %vm83_vm0, %v80_v0, 0.0  ;;  %v84_v3 = vsel %vm83_vm0, %v79_v1, 0.0 }
  0x14   :  { %88 = vadd.xlane.f32.xlu0 %v87_v2 }
  0x1c   :  { %85 = vadd.xlane.f32.xlu0 %v84_v3 }
  0x1d   :  { %32 = vsyncpa [#allocation5], 0  ;;  %v2102_v4 = vmov 32.0   ;;  %s2900_s1 = sld [smem:[#allocation16_spill]]  ;;  %vm246_vm8 = vcmask 130048   ;;  %s1719_s6 = sshll.u32 %s2877_s23, 4  ;;  %s1720_s6 = int_to_ptr.hbm [resolvable:$true] %s1719_s6 }
  0x1e   :  { %1954 = vrcp.f32 %v2102_v4  ;;  %s2901_s2 = sld [smem:[#allocation14_spill]]  ;;  %s2108_s23 = smov [#allocation4]  }
  0x1f   :  { %s2902_s3 = sld [smem:[#allocation18_spill]] }
  0x20   :  { %s2903_s29 = sld [smem:[#allocation12_spill]] }
  0x21   :  { %s2904_s7 = sld [smem:[#allocation13_spill]] }
  0x22   :  { %s2905_s30 = sld [smem:[#allocation17_spill]] }
  0x23   :  { %v187_v21 = vld [vmem:[%s2900_s1 + $0x18] sm:$0xff]  ;;  %v186_v22 = vld [vmem:[%s2900_s1 + $0x10] sm:$0xff]  ;;  %v185_v23 = vld [vmem:[%s2900_s1 + $0x8] sm:$0xff]  ;;  %s2906_s8 = sld [smem:[#allocation15_spill]] }
  0x24   :  { %v1955_v5 = vpop.eup %1954  ;;  %1906 = vmatpush.msra.mxu3 %v187_v21  ;;  %204 = vmatpush.msra.mxu1 %v187_v21  ;;  %v184_v24 = vld [vmem:[%s2900_s1] sm:$0xff]  ;;  %v150_v25 = vld [vmem:[%s2901_s2 + $0x18] sm:$0xff]  ;;  %v149_v26 = vld [vmem:[%s2901_s2 + $0x10] sm:$0xff]  ;;  %s2907_s5 = sld [smem:[#allocation10_spill]] }
  0x25   :  { %v91_v6 = vmul.f32 32.0, %v1955_v5  ;;  %vm95_vm1 = vweird.f32 %v1955_v5  ;;  %173 = vmatpush.msra.mxu2 %v150_v25  ;;  %v148_v29 = vld [vmem:[%s2901_s2 + $0x8] sm:$0xff]  ;;  %v147_v31 = vld [vmem:[%s2901_s2] sm:$0xff]  ;;  %v1777_v32 = vld [vmem:[%s2901_s2 + $0x38] sm:$0xff] }
  0x26   :  { %1907 = vmatpush.msra.mxu3 %v186_v22  ;;  %205 = vmatpush.msra.mxu1 %v186_v22  ;;  %v1776_v33 = vld [vmem:[%s2901_s2 + $0x30] sm:$0xff]  ;;  %v1775_v34 = vld [vmem:[%s2901_s2 + $0x28] sm:$0xff]  ;;  %v1774_v37 = vld [vmem:[%s2901_s2 + $0x20] sm:$0xff] }
  0x27   :  { %v92_v7 = vsub.f32 1.0, %v91_v6  ;;  %174 = vmatpush.msra.mxu2 %v149_v26  ;;  %v218_v41 = vld [vmem:[%s2902_s3 + $0x18] sm:$0xff]  ;;  %v217_v42 = vld [vmem:[%s2902_s3 + $0x10] sm:$0xff]  ;;  %v216_v44 = vld [vmem:[%s2902_s3 + $0x8] sm:$0xff] }
  0x28   :  { %1908 = vmatpush.msra.mxu3 %v185_v23  ;;  %206 = vmatpush.msra.mxu1 %v185_v23  ;;  %v215_v46 = vld [vmem:[%s2902_s3] sm:$0xff]  ;;  %v1783_v2 = vld [vmem:[%s2900_s1 + $0x30] sm:$0xff]  ;;  %v1782_v3 = vld [vmem:[%s2900_s1 + $0x28] sm:$0xff] }
  0x29   :  { %v93_v8 = vmul.f32 %v1955_v5, %v92_v7  ;;  %175 = vmatpush.msra.mxu2 %v148_v29  ;;  %v1925_v51 = vld [vmem:[%s2903_s29] ss:$0 sm:$0xff]  ;;  %v1931_v26 = vld [vmem:[%s2905_s30 + $0x1] ss:$0 sm:$0xff] }
  0x2a   :  { %1909 = vmatpush.msra.mxu3 %v184_v24  ;;  %207 = vmatpush.msra.mxu1 %v184_v24  ;;  %v1926_v54 = vld [vmem:[%s2904_s7] ss:$0 sm:$0xff]  ;;  %s2109_s7 = smov [#allocation6]  }
  0x2b   :  { %v94_v9 = vadd.f32 %v1955_v5, %v93_v8  ;;  %176 = vmatpush.msra.mxu2 %v147_v31  ;;  %v1781_v4 = vld [vmem:[%s2900_s1 + $0x20] sm:$0xff] }
  0x2c   :  { %387 = vmatpush.msrb.mxu1 %v1777_v32  ;;  %v1930_v21 = vld [vmem:[%s2864_s10] ss:$0 sm:$0xff] }
  0x2d   :  { %v2248_v10 = vsel %vm95_vm1, %v1955_v5, %v94_v9  ;;  %235 = vmatpush.msrb.mxu2 %v218_v41  ;;  %v1927_v5 = vld [vmem:[%s2905_s30] ss:$0 sm:$0xff]  ;;  %v1932_v41 = vld [vmem:[%s2864_s10 + $0x1] ss:$0 sm:$0xff] }
  0x2e   :  { %388 = vmatpush.msrb.mxu1 %v1776_v33  ;;  %v2393_v31 = vld [vmem:[%s2907_s5] sm:$0xff] }
  0x2f   :  { %236 = vmatpush.msrb.mxu2 %v217_v42 }
  0x30   :  { %389 = vmatpush.msrb.mxu1 %v1775_v34 }
  0x31   :  { %237 = vmatpush.msrb.mxu2 %v216_v44 }
  0x32   :  { %390 = vmatpush.msrb.mxu1 %v1774_v37 }
  0x33   :  { %238 = vmatpush.msrb.mxu2 %v215_v46 }
  0x87   :  { %v89_v11 = vpop.xlane.xlu0 %88 }
  0x88   :  { %v98_v12 = vmul.f32 %v2248_v10, %v89_v11  ;;  %v1928_v11 = vld [vmem:[%s2906_s8] ss:$0 sm:$0xff] }
  0x8a   :  { %v2251_v13 = vsub.f32 %v80_v0, %v98_v12  ;;  %v1791_v12 = vld [vmem:[%s2902_s3 + $0x38] sm:$0xff] }
  0x8c   :  { %v102_v14 = vmul.f32 %v2251_v13, %v2251_v13 }
  0x8e   :  { %v106_v15 = vsel %vm83_vm0, %v102_v14, 0.0 }
  0x8f   :  { %107 = vadd.xlane.f32.xlu1 %v106_v15  ;;  %v86_v16 = vpop.xlane.xlu0 %85 }
  0x90   :  { %v97_v17 = vmul.f32 %v2248_v10, %v86_v16  ;;  %v1789_v16 = vld [vmem:[%s2902_s3 + $0x28] sm:$0xff] }
  0x92   :  { %v2257_v18 = vsub.f32 %v79_v1, %v97_v17  ;;  %v1784_v1 = vld [vmem:[%s2900_s1 + $0x38] sm:$0xff]  ;;  %v1788_v17 = vld [vmem:[%s2902_s3 + $0x20] sm:$0xff] }
  0x94   :  { %v101_v19 = vmul.f32 %v2257_v18, %v2257_v18 }
  0x96   :  { %v103_v20 = vsel %vm83_vm0, %v101_v19, 0.0 }
  0x97   :  { %104 = vadd.xlane.f32.xlu1 %v103_v20 }
 0x102   :  { %v108_v27 = vpop.xlane.xlu1 %107 }
 0x103   :  { %v110_v28 = vmul.f32 %v108_v27, %v2248_v10 }
 0x105   :  { %v112_v30 = vadd.f32 1e-12, %v110_v28 }
 0x107   :  { %1956 = vrsqrt.f32 %v112_v30  ;;  %vm129_vm3 = vweird.f32 %v112_v30 }
 0x10a   :  { %v105_v35 = vpop.xlane.xlu1 %104 }
 0x10b   :  { %v109_v36 = vmul.f32 %v105_v35, %v2248_v10 }
 0x10d   :  { %v1957_v38 = vpop.eup %1956  ;;  %v111_v39 = vadd.f32 1e-12, %v109_v36  ;;  %v2400_v36 = vld [vmem:[%s2907_s5 + $0x8] sm:$0xff] }
 0x10e   :  { %v124_v40 = vmul.f32 %v1957_v38, %v112_v30  ;;  %vm130_vm2 = vweird.f32 %v1957_v38 }
 0x10f   :  { %1958 = vrsqrt.f32 %v111_v39  ;;  %vm131_vm4 = vmor %vm129_vm3, %vm130_vm2  ;;  %vm119_vm6 = vweird.f32 %v111_v39 }
 0x110   :  { %v125_v43 = vmul.f32 %v1957_v38, %v124_v40 }
 0x112   :  { %v126_v45 = vmul.f32 0.5, %v125_v43 }
 0x114   :  { %v127_v47 = vsub.f32 1.5, %v126_v45 }
 0x115   :  { %v1959_v48 = vpop.eup %1958 }
 0x116   :  { %v128_v49 = vmul.f32 %v1957_v38, %v127_v47  ;;  %v114_v50 = vmul.f32 %v1959_v48, %v111_v39  ;;  %vm120_vm5 = vweird.f32 %v1959_v48 }
 0x117   :  { %vm121_vm7 = vmor %vm119_vm6, %vm120_vm5 }
 0x118   :  { %v132_v52 = vsel %vm131_vm4, %v1957_v38, %v128_v49  ;;  %v115_v53 = vmul.f32 %v1959_v48, %v114_v50 }
 0x119   :  { %v134_v55 = vmul.f32 %v132_v52, %v2251_v13  ;;  %v1790_v13 = vld [vmem:[%s2902_s3 + $0x30] sm:$0xff] }
 0x11a   :  { %v116_v56 = vmul.f32 0.5, %v115_v53 }
 0x11b   :  { %v139_v57 = vmul.f32 %v1925_v51, %v134_v55 }
 0x11c   :  { %v117_v58 = vsub.f32 1.5, %v116_v56 }
 0x11d   :  { %v2319_v59 = vadd.f32 %v1926_v54, %v139_v57 }
 0x11e   :  { %v118_v60 = vmul.f32 %v1959_v48, %v117_v58 }
 0x11f   :  { %1765 = vmatmul.msk.f32.vlgmr.msra.gmra.mxu3 %vm83_vm0, %v2319_v59 }
 0x120   :  { %v122_v61 = vsel %vm121_vm7, %v1959_v48, %v118_v60 }
 0x121   :  { %v133_v62 = vmul.f32 %v122_v61, %v2257_v18 }
 0x123   :  { %v138_v63 = vmul.f32 %v1925_v51, %v133_v62 }
 0x125   :  { %v2324_v0 = vadd.f32 %v1926_v54, %v138_v63 }
 0x127   :  { %1762 = vmatmul.msk.f32.vlgmr.msra.gmra.mxu2 %vm83_vm0, %v2324_v0  ;;  %1764 = vmatmul.msk.f32.vlgmr.msra.gmra.mxu1 %vm83_vm0, %v2324_v0 }
 0x128   :  { %420 = vmatpush.msra.mxu2 %v1784_v1  ;;  %v364_v1 = vld [vmem:[%s2865_s11 + $0x8] sm:$0xff] }
 0x12a   :  { %421 = vmatpush.msra.mxu2 %v1783_v2 }
 0x12c   :  { %422 = vmatpush.msra.mxu2 %v1782_v3 }
 0x12e   :  { %423 = vmatpush.msra.mxu2 %v1781_v4 }
 0x12f   :  { %1763 = vmatmul.msk.f32.gmra.mxu2 %vm83_vm0, %v2319_v59  ;;  %1779 = vmatmul.msk.f32.vlgmr.msrb.gmra.mxu1 %vm83_vm0, %v2324_v0 }
 0x137   :  { %1766 = vmatmul.msk.f32.vlgmr.msrb.gmra.mxu2 %vm83_vm0, %v2324_v0  ;;  %1780 = vmatmul.msk.f32.gmra.mxu1 %vm83_vm0, %v2319_v59 }
 0x13f   :  { %1767 = vmatmul.msk.f32.gmra.mxu2 %vm83_vm0, %v2319_v59 }
 0x147   :  { %1786 = vmatmul.msk.f32.vlgmr.msra.gmra.mxu2 %vm83_vm0, %v2324_v0 }
 0x14f   :  { %1787 = vmatmul.msk.f32.gmra.mxu2 %vm83_vm0, %v2319_v59 }
 0x1a2   :  { %v212_v6 = vpop.f32.mrf.mxu3 }
 0x1a3   :  { %v213_v7 = vadd.f32 %v1927_v5, %v212_v6 }
 0x1a4   :  { %v209_v8 = vpop.f32.mrf.mxu1 }
 0x1a5   :  { %1768 = vmatpush.xpose.msk.msrb.mxu3 %vm246_vm8, %v213_v7  ;;  %v210_v9 = vadd.f32 %v1927_v5, %v209_v8 }
 0x1a9   :  { %1769 = vmatpush.xpose.msk.msrb.mxu3 %vm246_vm8, %v210_v9 }
 0x1aa   :  { %v178_v14 = vpop.f32.mrf.mxu2 }
 0x1ab   :  { %v179_v15 = vadd.f32 %v1928_v11, %v178_v14 }
 0x1ad   :  { %453 = vmatpush.msra.mxu3 %v1791_v12 }
 0x1ae   :  { %1770 = vmatmul.msk.f32.vlgmr.msrb.gmra.mxu3 %vm246_vm8, %v179_v15 }
 0x1af   :  { %454 = vmatpush.msra.mxu3 %v1790_v13 }
 0x1b1   :  { %455 = vmatpush.msra.mxu3 %v1789_v16 }
 0x1b2   :  { %v181_v18 = vpop.f32.mrf.mxu2 }
 0x1b3   :  { %456 = vmatpush.msra.mxu3 %v1788_v17  ;;  %v182_v19 = vadd.f32 %v1928_v11, %v181_v18 }
 0x1b5   :  { %632 = vmatpush.msrb.mxu3 %v364_v1 }
 0x1b6   :  { %1771 = vmatmul.msk.f32.gmra.mxu3 %vm246_vm8, %v182_v19  ;;  %v392_v19 = vpop.f32.mrf.mxu1 }
 0x1ba   :  { %v240_v20 = vpop.f32.mrf.mxu2 }
 0x1bb   :  { %v241_v24 = vadd.f32 %v1930_v21, %v240_v20  ;;  %v1929_v20 = vld [vmem:[%s2906_s8 + $0x1] ss:$0 sm:$0xff] }
 0x1be   :  { %1793 = vmatmul.msk.f32.vlgmr.msra.gmra.mxu3 %vm83_vm0, %v2324_v0 }
 0x1c2   :  { %v243_v22 = vpop.f32.mrf.mxu2 }
 0x1c3   :  { %v244_v23 = vadd.f32 %v1930_v21, %v243_v22  ;;  %v393_v21 = vadd.f32 %v1929_v20, %v392_v19  ;;  %v395_v22 = vpop.f32.mrf.mxu1 }
 0x1c5   :  { %354 = vmatpush.msra.mxu0 %v244_v23  ;;  %v396_v23 = vadd.f32 %v1929_v20, %v395_v22 }
 0x1c6   :  { %1794 = vmatmul.msk.f32.gmra.mxu3 %vm83_vm0, %v2319_v59 }
 0x1c7   :  { %355 = vmatpush.msra.mxu0 %v241_v24  ;;  %v363_v24 = vld [vmem:[%s2865_s11] sm:$0xff] }
 0x1c8   :  { %633 = vmatpush.msrb.mxu3 %v363_v24 }
 0x1ca   :  { %v425_v25 = vpop.f32.mrf.mxu2 }
 0x1cb   :  { %v426_v29 = vadd.f32 %v1931_v26, %v425_v25 }
 0x1d2   :  { %v428_v27 = vpop.f32.mrf.mxu2 }
 0x1d3   :  { %v429_v28 = vadd.f32 %v1931_v26, %v428_v27 }
 0x1d5   :  { %1795 = vmatpush.xpose.msk.msrb.mxu0 %vm246_vm8, %v429_v28 }
 0x1d9   :  { %1796 = vmatpush.xpose.msk.msrb.mxu0 %vm246_vm8, %v426_v29 }
 0x231   :  { %v276_v30 = vpop.f32.mrf.mxu3 }
 0x232   :  { %v282_v32 = vmul.f32 0.25, %v276_v30 }
 0x234   :  { %v284_v33 = vadd.f32 %v282_v32, %v2393_v31 }
 0x236   :  { %v286_v34 = vsel %vm246_vm8, %v284_v33, -inf }
 0x237   :  { %287 = vmax.xlane.f32.xlu2 %v286_v34 }
 0x239   :  { %v279_v35 = vpop.f32.mrf.mxu3 }
 0x23a   :  { %v283_v37 = vmul.f32 0.25, %v279_v35 }
 0x23c   :  { %v285_v38 = vadd.f32 %v283_v37, %v2400_v36 }
 0x23e   :  { %v289_v39 = vsel %vm246_vm8, %v285_v38, -inf }
 0x23f   :  { %290 = vmax.xlane.f32.xlu2 %v289_v39 }
 0x241   :  { %v458_v40 = vpop.f32.mrf.mxu3 }
 0x242   :  { %v459_v44 = vadd.f32 %v1932_v41, %v458_v40 }
 0x249   :  { %v461_v42 = vpop.f32.mrf.mxu3 }
 0x24a   :  { %v462_v43 = vadd.f32 %v1932_v41, %v461_v42 }
 0x24c   :  { %571 = vmatpush.msra.mxu1 %v462_v43 }
 0x24e   :  { %572 = vmatpush.msra.mxu1 %v459_v44 }
 0x2aa   :  { %v288_v45 = vpop.xlane.xlu2 %287 }
 0x2ab   :  { %v292_v46 = vsub.f32 %v284_v33, %v288_v45 }
 0x2ad   :  { %v294_v47 = vmul.f32 1.442695, %v292_v46 }
 0x2af   :  { %1960 = vpow2.f32 %v294_v47  ;;  %v1802_v47 = vld [vmem:[%s2865_s11 + $0x18] sm:$0xff] }
 0x2b0   :  { %603 = vmatpush.msrb.mxu2 %v1802_v47 }
 0x2b2   :  { %v291_v48 = vpop.xlane.xlu2 %290 }
 0x2b3   :  { %v293_v49 = vsub.f32 %v285_v38, %v291_v48 }
 0x2b5   :  { %v1961_v50 = vpop.eup %1960  ;;  %v296_v51 = vmul.f32 1.442695, %v293_v49 }
 0x2b6   :  { %v298_v52 = vsel %vm246_vm8, %v1961_v50, 0.0 }
 0x2b7   :  { %1962 = vpow2.f32 %v296_v51  ;;  %299 = vadd.xlane.f32.xlu0 %v298_v52 }
 0x2bd   :  { %v1963_v53 = vpop.eup %1962 }
 0x2be   :  { %v301_v54 = vsel %vm246_vm8, %v1963_v53, 0.0 }
 0x2bf   :  { %302 = vadd.xlane.f32.xlu1 %v301_v54 }
 0x32a   :  { %v300_v55 = vpop.xlane.xlu0 %299 }
 0x32b   :  { %1964 = vrcp.f32 %v300_v55  ;;  %v315_v61 = vand.u32 2147483648, %v300_v55  ;;  %v313_v63 = vand.u32 2147483647, %v300_v55  ;;  %vm309_vm10 = vweird.f32 %v300_v55 }
 0x32d   :  { %v316_v4 = vor.u32 1.1754944e-38, %v315_v61  ;;  %vm314_vm12 = vcmp.eq.f32.partialorder %v313_v63, 8.507059e+37 }
 0x331   :  { %v1965_v56 = vpop.eup %1964 }
 0x332   :  { %v305_v57 = vmul.f32 %v1965_v56, %v300_v55  ;;  %v303_v58 = vpop.xlane.xlu1 %302  ;;  %vm310_vm9 = vweird.f32 %v1965_v56 }
 0x333   :  { %1966 = vrcp.f32 %v303_v58  ;;  %vm311_vm11 = vmor %vm309_vm10, %vm310_vm9  ;;  %v330_v11 = vand.u32 2147483648, %v303_v58  ;;  %v328_v13 = vand.u32 2147483647, %v303_v58  ;;  %vm324_vm14 = vweird.f32 %v303_v58 }
 0x334   :  { %v306_v60 = vsub.f32 1.0, %v305_v57 }
 0x335   :  { %v331_v15 = vor.u32 1.1754944e-38, %v330_v11  ;;  %vm329_vm1 = vcmp.eq.f32.partialorder %v328_v13, 8.507059e+37  ;;  %v1801_v11 = vld [vmem:[%s2865_s11 + $0x10] sm:$0xff] }
 0x336   :  { %v307_v62 = vmul.f32 %v1965_v56, %v306_v60  ;;  %604 = vmatpush.msrb.mxu2 %v1801_v11 }
 0x338   :  { %v308_v2 = vadd.f32 %v1965_v56, %v307_v62 }
 0x339   :  { %v1967_v3 = vpop.eup %1966 }
 0x33a   :  { %v320_v5 = vmul.f32 %v1967_v3, %v303_v58  ;;  %v312_v6 = vsel %vm311_vm11, %v1965_v56, %v308_v2  ;;  %vm325_vm13 = vweird.f32 %v1967_v3 }
 0x33b   :  { %v317_v7 = vsel %vm314_vm12, %v316_v4, %v312_v6  ;;  %vm326_vm15 = vmor %vm324_vm14, %vm325_vm13 }
 0x33c   :  { %v321_v8 = vsub.f32 1.0, %v320_v5  ;;  %v318_v9 = vmul.f32 %v1961_v50, %v317_v7 }
 0x33e   :  { %v322_v12 = vmul.f32 %v1967_v3, %v321_v8  ;;  %1772 = vmatmul.msk.f32.vlgmr.msra.gmra.mxu0 %vm246_vm8, %v318_v9 }
 0x340   :  { %v323_v14 = vadd.f32 %v1967_v3, %v322_v12 }
 0x342   :  { %v327_v16 = vsel %vm326_vm15, %v1967_v3, %v323_v14 }
 0x343   :  { %v332_v17 = vsel %vm329_vm1, %v331_v15, %v327_v16 }
 0x344   :  { %v333_v18 = vmul.f32 %v1963_v53, %v332_v17  ;;  %v1933_v17 = vld [vmem:[%s2866_s12] ss:$0 sm:$0xff] }
 0x346   :  { %1773 = vmatmul.msk.f32.gmra.mxu0 %vm246_vm8, %v333_v18 }
 0x34e   :  { %1797 = vmatmul.msk.f32.vlgmr.msrb.gmra.mxu0 %vm246_vm8, %v393_v21 }
 0x356   :  { %1798 = vmatmul.msk.f32.gmra.mxu0 %vm246_vm8, %v396_v23 }
 0x3bb   :  { %v357_v25 = vpop.f32.mrf.mxu0 }
 0x3bc   :  { %1805 = vmatmul.msk.f32.vlgmr.msrb.gmra.mxu3 %vm246_vm8, %v357_v25 }
 0x3c3   :  { %v360_v26 = vpop.f32.mrf.mxu0 }
 0x3c4   :  { %1806 = vmatmul.msk.f32.gmra.mxu3 %vm246_vm8, %v360_v26 }
 0x3cb   :  { %v493_v27 = vpop.f32.mrf.mxu0 }
 0x3cc   :  { %v499_v28 = vmul.f32 0.25, %v493_v27 }
 0x3ce   :  { %v501_v29 = vadd.f32 %v499_v28, %v2393_v31 }
 0x3d0   :  { %v503_v30 = vsel %vm246_vm8, %v501_v29, -inf }
 0x3d1   :  { %504 = vmax.xlane.f32.xlu2 %v503_v30 }
 0x3d3   :  { %v496_v32 = vpop.f32.mrf.mxu0 }
 0x3d4   :  { %v500_v33 = vmul.f32 0.25, %v496_v32 }
 0x3d6   :  { %v502_v34 = vadd.f32 %v500_v33, %v2400_v36 }
 0x3d8   :  { %v506_v35 = vsel %vm246_vm8, %v502_v34, -inf }
 0x3d9   :  { %507 = vmax.xlane.f32.xlu0 %v506_v35 }
 0x43f   :  { %v635_v14 = vpop.f32.mrf.mxu3 }
 0x444   :  { %v505_v37 = vpop.xlane.xlu2 %504 }
 0x445   :  { %v509_v38 = vsub.f32 %v501_v29, %v505_v37 }
 0x447   :  { %v511_v39 = vmul.f32 1.442695, %v509_v38  ;;  %v638_v21 = vpop.f32.mrf.mxu3  ;;  %v707_v38 = vld [vmem:[%s2869_s15 + $0x10] sm:$0xff] }
 0x449   :  { %1968 = vpow2.f32 %v511_v39  ;;  %v706_v39 = vld [vmem:[%s2869_s15 + $0x8] sm:$0xff] }
 0x44c   :  { %v508_v40 = vpop.xlane.xlu0 %507 }
 0x44d   :  { %v510_v41 = vsub.f32 %v502_v34, %v508_v40  ;;  %v705_v40 = vld [vmem:[%s2869_s15] sm:$0xff] }
 0x44f   :  { %v1969_v42 = vpop.eup %1968  ;;  %v513_v43 = vmul.f32 1.442695, %v510_v41 }
 0x450   :  { %v515_v44 = vsel %vm246_vm8, %v1969_v42, 0.0 }
 0x451   :  { %1970 = vpow2.f32 %v513_v43  ;;  %516 = vadd.xlane.f32.xlu1 %v515_v44  ;;  %v775_v44 = vld [vmem:[%s2871_s17 + $0x78] sm:$0xff] }
 0x452   :  { %780 = vmatpush.msrb.mxu1 %v775_v44 }
 0x457   :  { %v1971_v45 = vpop.eup %1970 }
 0x458   :  { %v518_v46 = vsel %vm246_vm8, %v1971_v45, 0.0 }
 0x459   :  { %519 = vadd.xlane.f32.xlu2 %v518_v46  ;;  %v773_v46 = vld [vmem:[%s2871_s17 + $0x68] sm:$0xff] }
 0x4c4   :  { %v517_v48 = vpop.xlane.xlu1 %516 }
 0x4c5   :  { %1972 = vrcp.f32 %v517_v48  ;;  %v532_v53 = vand.u32 2147483648, %v517_v48  ;;  %v530_v55 = vand.u32 2147483647, %v517_v48  ;;  %vm526_vm3 = vweird.f32 %v517_v48 }
 0x4c7   :  { %v533_v58 = vor.u32 1.1754944e-38, %v532_v53  ;;  %vm531_vm5 = vcmp.eq.f32.partialorder %v530_v55, 8.507059e+37 }
 0x4cb   :  { %v1973_v49 = vpop.eup %1972 }
 0x4cc   :  { %v522_v50 = vmul.f32 %v1973_v49, %v517_v48  ;;  %v520_v51 = vpop.xlane.xlu2 %519  ;;  %vm527_vm2 = vweird.f32 %v1973_v49 }
 0x4cd   :  { %1974 = vrcp.f32 %v520_v51  ;;  %vm528_vm4 = vmor %vm526_vm3, %vm527_vm2  ;;  %v547_v2 = vand.u32 2147483648, %v520_v51  ;;  %v545_v4 = vand.u32 2147483647, %v520_v51  ;;  %vm541_vm7 = vweird.f32 %v520_v51 }
 0x4ce   :  { %v523_v52 = vsub.f32 1.0, %v522_v50 }
 0x4cf   :  { %v548_v6 = vor.u32 1.1754944e-38, %v547_v2  ;;  %vm546_vm10 = vcmp.eq.f32.partialorder %v545_v4, 8.507059e+37 }
 0x4d0   :  { %v524_v54 = vmul.f32 %v1973_v49, %v523_v52 }
 0x4d2   :  { %v525_v56 = vadd.f32 %v1973_v49, %v524_v54 }
 0x4d3   :  { %v1975_v57 = vpop.eup %1974 }
 0x4d4   :  { %v529_v60 = vsel %vm528_vm4, %v1973_v49, %v525_v56  ;;  %v537_v61 = vmul.f32 %v1975_v57, %v520_v51  ;;  %vm542_vm6 = vweird.f32 %v1975_v57  ;;  %v772_v49 = vld [vmem:[%s2871_s17 + $0x60] sm:$0xff] }
 0x4d5   :  { %v534_v62 = vsel %vm531_vm5, %v533_v58, %v529_v60  ;;  %vm543_vm9 = vmor %vm541_vm7, %vm542_vm6  ;;  %v1934_v60 = vld [vmem:[%s2867_s13] ss:$0 sm:$0xff] }
 0x4d6   :  { %v538_v63 = vsub.f32 1.0, %v537_v61  ;;  %v535_v1 = vmul.f32 %v1969_v42, %v534_v62 }
 0x4d8   :  { %v539_v3 = vmul.f32 %v1975_v57, %v538_v63  ;;  %1799 = vmatmul.msk.f32.vlgmr.msra.gmra.mxu1 %vm246_vm8, %v535_v1  ;;  %v1935_v1 = vld [vmem:[%s2868_s14] ss:$0 sm:$0xff] }
 0x4da   :  { %v540_v5 = vadd.f32 %v1975_v57, %v539_v3 }
 0x4dc   :  { %v544_v7 = vsel %vm543_vm9, %v1975_v57, %v540_v5 }
 0x4dd   :  { %v549_v8 = vsel %vm546_vm10, %v548_v6, %v544_v7 }
 0x4de   :  { %v550_v9 = vmul.f32 %v1971_v45, %v549_v8  ;;  %v774_v45 = vld [vmem:[%s2871_s17 + $0x70] sm:$0xff] }
 0x4df   :  { %781 = vmatpush.msrb.mxu1 %v774_v45 }
 0x4e0   :  { %1800 = vmatmul.msk.f32.gmra.mxu1 %vm246_vm8, %v550_v9 }
 0x4e1   :  { %782 = vmatpush.msrb.mxu1 %v773_v46 }
 0x4e3   :  { %783 = vmatpush.msrb.mxu1 %v772_v49 }
 0x555   :  { %v574_v12 = vpop.f32.mrf.mxu1 }
 0x556   :  { %1803 = vmatmul.msk.f32.vlgmr.msrb.gmra.mxu2 %vm246_vm8, %v574_v12  ;;  %v771_v12 = vld [vmem:[%s2871_s17 + $0x58] sm:$0xff] }
 0x557   :  { %784 = vmatpush.msrb.mxu1 %v771_v12  ;;  %v1847_v12 = vld [vmem:[%s2900_s1 + $0x70] sm:$0xff] }
 0x55d   :  { %v577_v13 = vpop.f32.mrf.mxu1 }
 0x55e   :  { %1804 = vmatmul.msk.f32.gmra.mxu2 %vm246_vm8, %v577_v13  ;;  %v770_v13 = vld [vmem:[%s2871_s17 + $0x50] sm:$0xff] }
 0x55f   :  { %785 = vmatpush.msrb.mxu1 %v770_v13  ;;  %v1810_v13 = vld [vmem:[%s2901_s2 + $0x48] sm:$0xff] }
 0x5d9   :  { %v606_v15 = vpop.f32.mrf.mxu2 }
 0x5da   :  { %v636_v16 = vadd.f32 %v635_v14, %v606_v15  ;;  %v769_v14 = vld [vmem:[%s2871_s17 + $0x48] sm:$0xff]  ;;  %v768_v15 = vld [vmem:[%s2871_s17 + $0x40] sm:$0xff] }
 0x5db   :  { %786 = vmatpush.msrb.mxu1 %v769_v14  ;;  %v1817_v14 = vld [vmem:[%s2900_s1 + $0x48] sm:$0xff] }
 0x5dc   :  { %v641_v18 = vadd.f32 %v636_v16, %v2324_v0  ;;  %v767_v16 = vld [vmem:[%s2871_s17 + $0x38] sm:$0xff] }
 0x5dd   :  { %787 = vmatpush.msrb.mxu1 %v768_v15  ;;  %v1824_v15 = vld [vmem:[%s2902_s3 + $0x48] sm:$0xff] }
 0x5de   :  { %v647_v19 = vadd.f32 %v1933_v17, %v641_v18  ;;  %v765_v18 = vld [vmem:[%s2871_s17 + $0x28] sm:$0xff] }
 0x5df   :  { %788 = vmatpush.msrb.mxu1 %v767_v16  ;;  %v1846_v16 = vld [vmem:[%s2900_s1 + $0x68] sm:$0xff] }
 0x5e0   :  { %v651_v20 = vsel %vm83_vm0, %v647_v19, 0.0 }
 0x5e1   :  { %652 = vadd.xlane.f32.xlu0 %v651_v20  ;;  %v609_v22 = vpop.f32.mrf.mxu2  ;;  %v763_v20 = vld [vmem:[%s2871_s17 + $0x18] sm:$0xff] }
 0x5e2   :  { %v639_v23 = vadd.f32 %v638_v21, %v609_v22  ;;  %v762_v21 = vld [vmem:[%s2871_s17 + $0x10] sm:$0xff]  ;;  %v761_v22 = vld [vmem:[%s2871_s17 + $0x8] sm:$0xff] }
 0x5e4   :  { %v642_v24 = vadd.f32 %v639_v23, %v2319_v59  ;;  %v708_v59 = vld [vmem:[%s2869_s15 + $0x18] sm:$0xff]  ;;  %v760_v23 = vld [vmem:[%s2871_s17] sm:$0xff] }
 0x5e5   :  { %731 = vmatpush.msra.mxu0 %v708_v59 }
 0x5e6   :  { %v648_v25 = vadd.f32 %v1933_v17, %v642_v24  ;;  %v766_v17 = vld [vmem:[%s2871_s17 + $0x30] sm:$0xff]  ;;  %v1936_v24 = vld [vmem:[%s2870_s16] ss:$0 sm:$0xff] }
 0x5e7   :  { %732 = vmatpush.msra.mxu0 %v707_v38  ;;  %789 = vmatpush.msrb.mxu1 %v766_v17  ;;  %v1809_v17 = vld [vmem:[%s2901_s2 + $0x40] sm:$0xff] }
 0x5e8   :  { %v654_v26 = vsel %vm83_vm0, %v648_v25, 0.0 }
 0x5e9   :  { %655 = vadd.xlane.f32.xlu1 %v654_v26  ;;  %733 = vmatpush.msra.mxu0 %v706_v39 }
 0x5ea   :  { %790 = vmatpush.msrb.mxu1 %v765_v18  ;;  %v1816_v18 = vld [vmem:[%s2900_s1 + $0x40] sm:$0xff] }
 0x5eb   :  { %734 = vmatpush.msra.mxu0 %v705_v40 }
 0x654   :  { %v653_v27 = vpop.xlane.xlu0 %652 }
 0x655   :  { %v657_v28 = vmul.f32 %v653_v27, %v2248_v10 }
 0x657   :  { %v659_v29 = vsub.f32 %v647_v19, %v657_v28  ;;  %v764_v19 = vld [vmem:[%s2871_s17 + $0x20] sm:$0xff] }
 0x658   :  { %791 = vmatpush.msrb.mxu1 %v764_v19  ;;  %v1823_v19 = vld [vmem:[%s2902_s3 + $0x40] sm:$0xff] }
 0x659   :  { %v661_v30 = vmul.f32 %v659_v29, %v659_v29 }
 0x65a   :  { %792 = vmatpush.msrb.mxu1 %v763_v20  ;;  %v1845_v20 = vld [vmem:[%s2900_s1 + $0x60] sm:$0xff] }
 0x65b   :  { %v663_v0 = vsel %vm83_vm0, %v661_v30, 0.0 }
 0x65c   :  { %v656_v32 = vpop.xlane.xlu1 %655  ;;  %664 = vadd.xlane.f32.xlu2 %v663_v0  ;;  %793 = vmatpush.msrb.mxu1 %v762_v21 }
 0x65d   :  { %v658_v33 = vmul.f32 %v656_v32, %v2248_v10 }
 0x65e   :  { %794 = vmatpush.msrb.mxu1 %v761_v22 }
 0x65f   :  { %v660_v34 = vsub.f32 %v648_v25, %v658_v33 }
 0x660   :  { %795 = vmatpush.msrb.mxu1 %v760_v23 }
 0x661   :  { %v662_v35 = vmul.f32 %v660_v34, %v660_v34 }
 0x663   :  { %v666_v37 = vsel %vm83_vm0, %v662_v35, 0.0 }
 0x664   :  { %667 = vadd.xlane.f32.xlu0 %v666_v37 }
 0x6cf   :  { %v665_v41 = vpop.xlane.xlu2 %664 }
 0x6d0   :  { %v669_v42 = vmul.f32 %v665_v41, %v2248_v10 }
 0x6d2   :  { %v671_v43 = vadd.f32 1e-12, %v669_v42 }
 0x6d4   :  { %1976 = vrsqrt.f32 %v671_v43  ;;  %vm679_vm12 = vweird.f32 %v671_v43 }
 0x6d7   :  { %v668_v47 = vpop.xlane.xlu0 %667 }
 0x6d8   :  { %v670_v48 = vmul.f32 %v668_v47, %v2248_v10  ;;  %v1937_v47 = vld [vmem:[%s2872_s18] ss:$0 sm:$0xff] }
 0x6da   :  { %v1977_v50 = vpop.eup %1976  ;;  %v672_v51 = vadd.f32 1e-12, %v670_v48 }
 0x6db   :  { %v674_v52 = vmul.f32 %v1977_v50, %v671_v43  ;;  %vm680_vm11 = vweird.f32 %v1977_v50 }
 0x6dc   :  { %1978 = vrsqrt.f32 %v672_v51  ;;  %vm681_vm13 = vmor %vm679_vm12, %vm680_vm11  ;;  %vm689_vm15 = vweird.f32 %v672_v51 }
 0x6dd   :  { %v675_v53 = vmul.f32 %v1977_v50, %v674_v52 }
 0x6df   :  { %v676_v54 = vmul.f32 0.5, %v675_v53 }
 0x6e1   :  { %v677_v55 = vsub.f32 1.5, %v676_v54 }
 0x6e2   :  { %v1979_v56 = vpop.eup %1978 }
 0x6e3   :  { %v678_v57 = vmul.f32 %v1977_v50, %v677_v55  ;;  %v684_v58 = vmul.f32 %v1979_v56, %v672_v51  ;;  %vm690_vm14 = vweird.f32 %v1979_v56 }
 0x6e4   :  { %vm691_vm1 = vmor %vm689_vm15, %vm690_vm14 }
 0x6e5   :  { %v682_v61 = vsel %vm681_vm13, %v1977_v50, %v678_v57  ;;  %v685_v62 = vmul.f32 %v1979_v56, %v684_v58 }
 0x6e6   :  { %v693_v63 = vmul.f32 %v682_v61, %v659_v29 }
 0x6e7   :  { %v686_v2 = vmul.f32 0.5, %v685_v62 }
 0x6e8   :  { %v698_v3 = vmul.f32 %v1934_v60, %v693_v63 }
 0x6e9   :  { %v687_v4 = vsub.f32 1.5, %v686_v2 }
 0x6ea   :  { %v2483_v5 = vadd.f32 %v1935_v1, %v698_v3 }
 0x6eb   :  { %v688_v6 = vmul.f32 %v1979_v56, %v687_v4  ;;  %v1812_v4 = vld [vmem:[%s2901_s2 + $0x58] sm:$0xff] }
 0x6ec   :  { %1807 = vmatmul.msk.f32.vlgmr.msra.gmra.mxu0 %vm83_vm0, %v2483_v5  ;;  %889 = vmatpush.msra.mxu2 %v1812_v4 }
 0x6ed   :  { %v692_v7 = vsel %vm691_vm1, %v1979_v56, %v688_v6  ;;  %v1826_v6 = vld [vmem:[%s2902_s3 + $0x58] sm:$0xff] }
 0x6ee   :  { %v694_v8 = vmul.f32 %v692_v7, %v660_v34  ;;  %v1848_v7 = vld [vmem:[%s2900_s1 + $0x78] sm:$0xff]  ;;  %955 = vmatpush.msrb.mxu0 %v1826_v6  ;;  %v1942_v6 = vld [vmem:[%s2906_s8 + $0x2] ss:$0 sm:$0xff] }
 0x6ef   :  { %1140 = vmatpush.msra.mxu1 %v1848_v7 }
 0x6f0   :  { %v699_v9 = vmul.f32 %v1934_v60, %v694_v8  ;;  %v1811_v8 = vld [vmem:[%s2901_s2 + $0x50] sm:$0xff] }
 0x6f1   :  { %890 = vmatpush.msra.mxu2 %v1811_v8  ;;  %1141 = vmatpush.msra.mxu1 %v1847_v12  ;;  %v1855_v8 = vld [vmem:[%s2902_s3 + $0x78] sm:$0xff]  ;;  %v1853_v12 = vld [vmem:[%s2902_s3 + $0x68] sm:$0xff] }
 0x6f2   :  { %v704_v11 = vadd.f32 %v1935_v1, %v699_v9  ;;  %v1818_v9 = vld [vmem:[%s2900_s1 + $0x50] sm:$0xff] }
 0x6f3   :  { %891 = vmatpush.msra.mxu2 %v1810_v13  ;;  %1142 = vmatpush.msra.mxu1 %v1846_v16  ;;  %v1852_v13 = vld [vmem:[%s2902_s3 + $0x60] sm:$0xff] }
 0x6f4   :  { %1808 = vmatmul.msk.f32.gmra.mxu0 %vm83_vm0, %v704_v11 }
 0x6f5   :  { %892 = vmatpush.msra.mxu2 %v1809_v17  ;;  %1143 = vmatpush.msra.mxu1 %v1845_v20 }
 0x769   :  { %v736_v25 = vpop.f32.mrf.mxu0 }
 0x76a   :  { %v737_v26 = vadd.f32 %v1936_v24, %v736_v25  ;;  %v1840_v25 = vld [vmem:[%s2901_s2 + $0x70] sm:$0xff] }
 0x76c   :  { %v744_v27 = vmul.f32 0.044715, %v737_v26  ;;  %v742_v40 = vmul.f32 0.5, %v737_v26 }
 0x76e   :  { %v746_v28 = vmul.f32 %v744_v27, %v737_v26  ;;  %v1839_v27 = vld [vmem:[%s2901_s2 + $0x68] sm:$0xff] }
 0x770   :  { %v748_v29 = vmul.f32 %v746_v28, %v737_v26 }
 0x771   :  { %v739_v30 = vpop.f32.mrf.mxu0 }
 0x772   :  { %v740_v0 = vadd.f32 %v1936_v24, %v739_v30  ;;  %v750_v32 = vadd.f32 %v748_v29, %v737_v26  ;;  %v1841_v24 = vld [vmem:[%s2901_s2 + $0x78] sm:$0xff]  ;;  %v1838_v29 = vld [vmem:[%s2901_s2 + $0x60] sm:$0xff] }
 0x774   :  { %v752_v33 = vmul.f32 0.7978846, %v750_v32  ;;  %v745_v34 = vmul.f32 0.044715, %v740_v0  ;;  %v743_v44 = vmul.f32 0.5, %v740_v0 }
 0x776   :  { %1980 = vtanh.f32 %v752_v33  ;;  %v747_v35 = vmul.f32 %v745_v34, %v740_v0 }
 0x778   :  { %v749_v37 = vmul.f32 %v747_v35, %v740_v0 }
 0x77a   :  { %v751_v59 = vadd.f32 %v749_v37, %v740_v0 }
 0x77c   :  { %v1981_v38 = vpop.eup %1980  ;;  %v753_v39 = vmul.f32 0.7978846, %v751_v59 }
 0x77d   :  { %v756_v41 = vadd.f32 1.0, %v1981_v38 }
 0x77e   :  { %1982 = vtanh.f32 %v753_v39  ;;  %v1938_v39 = vld [vmem:[%s2873_s19] ss:$0 sm:$0xff] }
 0x77f   :  { %v758_v42 = vmul.f32 %v756_v41, %v742_v40 }
 0x781   :  { %796 = vmatmul.f32.vlgmr.msrb.gmra.mxu1 %v758_v42  ;;  %v1939_v42 = vld [vmem:[%s2874_s20] ss:$0 sm:$0xff] }
 0x784   :  { %v1983_v43 = vpop.eup %1982 }
 0x785   :  { %v757_v45 = vadd.f32 1.0, %v1983_v43 }
 0x787   :  { %v759_v46 = vmul.f32 %v757_v45, %v743_v44 }
 0x789   :  { %799 = vmatmul.f32.gmra.mxu1 %v759_v46 }
 0x7fe   :  { %v797_v48 = vpop.f32.mrf.mxu1 }
 0x7ff   :  { %v798_v49 = vadd.f32 %v1937_v47, %v797_v48 }
 0x801   :  { %v803_v50 = vadd.f32 %v798_v49, %v2483_v5  ;;  %v1819_v5 = vld [vmem:[%s2900_s1 + $0x58] sm:$0xff]  ;;  %s2909_s1 = sld [smem:[#allocation19_spill]] }
 0x802   :  { %922 = vmatpush.msra.mxu3 %v1819_v5 }
 0x803   :  { %v807_v51 = vsel %vm83_vm0, %v803_v50, 0.0 }
 0x804   :  { %808 = vadd.xlane.f32.xlu1 %v807_v51  ;;  %923 = vmatpush.msra.mxu3 %v1818_v9 }
 0x806   :  { %v800_v52 = vpop.f32.mrf.mxu1  ;;  %924 = vmatpush.msra.mxu3 %v1817_v14 }
 0x807   :  { %v801_v53 = vadd.f32 %v1937_v47, %v800_v52  ;;  %s1744_s4 = sshll.u32 %s2909_s1, 4  ;;  %s1745_s4 = int_to_ptr.hbm [resolvable:$true] %s1744_s4 }
 0x808   :  { %925 = vmatpush.msra.mxu3 %v1816_v18 }
 0x809   :  { %v804_v54 = vadd.f32 %v801_v53, %v704_v11  ;;  %v1825_v11 = vld [vmem:[%s2902_s3 + $0x50] sm:$0xff] }
 0x80a   :  { %956 = vmatpush.msrb.mxu0 %v1825_v11  ;;  %v1854_v11 = vld [vmem:[%s2902_s3 + $0x70] sm:$0xff]  ;;  %s2105_s3 = smov [#allocation2]  }
 0x80b   :  { %v810_v55 = vsel %vm83_vm0, %v804_v54, 0.0 }
 0x80c   :  { %811 = vadd.xlane.f32.xlu2 %v810_v55  ;;  %957 = vmatpush.msrb.mxu0 %v1824_v15 }
 0x80e   :  { %958 = vmatpush.msrb.mxu0 %v1823_v19 }
 0x810   :  { %1107 = vmatpush.msra.mxu0 %v1841_v24 }
 0x812   :  { %1108 = vmatpush.msra.mxu0 %v1840_v25  ;;  %v1945_v25 = vld [vmem:[%s2864_s10 + $0x3] ss:$0 sm:$0xff] }
 0x814   :  { %1109 = vmatpush.msra.mxu0 %v1839_v27 }
 0x816   :  { %1110 = vmatpush.msra.mxu0 %v1838_v29 }
 0x877   :  { %v809_v56 = vpop.xlane.xlu1 %808 }
 0x878   :  { %v813_v57 = vmul.f32 %v809_v56, %v2248_v10  ;;  %v1940_v56 = vld [vmem:[%s2864_s10 + $0x2] ss:$0 sm:$0xff]  ;;  %s1742_s10 = sshll.u32 %s2109_s7, 4  ;;  %s1743_s10 = int_to_ptr.vmem [resolvable:$true] %s1742_s10 }
 0x87a   :  { %v2534_v58 = vsub.f32 %v803_v50, %v813_v57 }
 0x87c   :  { %v817_v60 = vmul.f32 %v2534_v58, %v2534_v58 }
 0x87e   :  { %v819_v61 = vsel %vm83_vm0, %v817_v60, 0.0 }
 0x87f   :  { %820 = vadd.xlane.f32.xlu0 %v819_v61  ;;  %v812_v62 = vpop.xlane.xlu2 %811  ;;  %v1941_v61 = vld [vmem:[%s2905_s30 + $0x3] ss:$0 sm:$0xff] }
 0x880   :  { %v814_v63 = vmul.f32 %v812_v62, %v2248_v10 }
 0x882   :  { %v2540_v1 = vsub.f32 %v804_v54, %v814_v63  ;;  %v1943_v63 = vld [vmem:[%s2905_s30 + $0x2] ss:$0 sm:$0xff] }
 0x884   :  { %v818_v2 = vmul.f32 %v2540_v1, %v2540_v1 }
 0x886   :  { %v822_v3 = vsel %vm83_vm0, %v818_v2, 0.0 }
 0x887   :  { %823 = vadd.xlane.f32.xlu1 %v822_v3 }
 0x8f2   :  { %v821_v21 = vpop.xlane.xlu0 %820 }
 0x8f3   :  { %v825_v22 = vmul.f32 %v821_v21, %v2248_v10 }
 0x8f5   :  { %v827_v23 = vadd.f32 1e-12, %v825_v22 }
 0x8f7   :  { %1984 = vrsqrt.f32 %v827_v23  ;;  %vm835_vm3 = vweird.f32 %v827_v23 }
 0x8fa   :  { %v824_v26 = vpop.xlane.xlu1 %823 }
 0x8fb   :  { %v826_v28 = vmul.f32 %v824_v26, %v2248_v10 }
 0x8fd   :  { %v1985_v30 = vpop.eup %1984  ;;  %v828_v0 = vadd.f32 1e-12, %v826_v28 }
 0x8fe   :  { %v830_v32 = vmul.f32 %v1985_v30, %v827_v23  ;;  %vm836_vm2 = vweird.f32 %v1985_v30 }
 0x8ff   :  { %1986 = vrsqrt.f32 %v828_v0  ;;  %vm837_vm4 = vmor %vm835_vm3, %vm836_vm2  ;;  %vm845_vm6 = vweird.f32 %v828_v0 }
 0x900   :  { %v831_v33 = vmul.f32 %v1985_v30, %v830_v32 }
 0x902   :  { %v832_v34 = vmul.f32 0.5, %v831_v33 }
 0x904   :  { %v833_v35 = vsub.f32 1.5, %v832_v34 }
 0x905   :  { %v1987_v37 = vpop.eup %1986 }
 0x906   :  { %v834_v59 = vmul.f32 %v1985_v30, %v833_v35  ;;  %v840_v38 = vmul.f32 %v1987_v37, %v828_v0  ;;  %vm846_vm5 = vweird.f32 %v1987_v37 }
 0x907   :  { %vm847_vm7 = vmor %vm845_vm6, %vm846_vm5 }
 0x908   :  { %v838_v40 = vsel %vm837_vm4, %v1985_v30, %v834_v59  ;;  %v841_v41 = vmul.f32 %v1987_v37, %v840_v38 }
 0x909   :  { %v849_v43 = vmul.f32 %v838_v40, %v2534_v58 }
 0x90a   :  { %v842_v44 = vmul.f32 0.5, %v841_v41 }
 0x90b   :  { %v854_v45 = vmul.f32 %v1938_v39, %v849_v43 }
 0x90c   :  { %v843_v46 = vsub.f32 1.5, %v842_v44 }
 0x90d   :  { %v2614_v47 = vadd.f32 %v1939_v42, %v854_v45  ;;  %v1837_v45 = vld [vmem:[%s2865_s11 + $0x28] sm:$0xff] }
 0x90e   :  { %v844_v48 = vmul.f32 %v1987_v37, %v843_v46 }
 0x90f   :  { %1814 = vmatmul.msk.f32.vlgmr.msra.gmra.mxu2 %vm83_vm0, %v2614_v47  ;;  %1821 = vmatmul.msk.f32.vlgmr.msra.gmra.mxu3 %vm83_vm0, %v2614_v47 }
 0x910   :  { %v848_v49 = vsel %vm847_vm7, %v1987_v37, %v844_v48  ;;  %1828 = vmatmul.msk.f32.vlgmr.msrb.gmra.mxu0 %vm83_vm0, %v2614_v47  ;;  %1850 = vmatmul.msk.f32.vlgmr.msra.gmra.mxu1 %vm83_vm0, %v2614_v47 }
 0x911   :  { %v850_v50 = vmul.f32 %v848_v49, %v2540_v1 }
 0x913   :  { %v855_v51 = vmul.f32 %v1938_v39, %v850_v50 }
 0x915   :  { %v2625_v52 = vadd.f32 %v1939_v42, %v855_v51 }
 0x917   :  { %1815 = vmatmul.msk.f32.gmra.mxu2 %vm83_vm0, %v2625_v52  ;;  %1822 = vmatmul.msk.f32.gmra.mxu3 %vm83_vm0, %v2625_v52 }
 0x918   :  { %1829 = vmatmul.msk.f32.gmra.mxu0 %vm83_vm0, %v2625_v52  ;;  %1851 = vmatmul.msk.f32.gmra.mxu1 %vm83_vm0, %v2625_v52 }
 0x920   :  { %1843 = vmatmul.msk.f32.vlgmr.msra.gmra.mxu0 %vm83_vm0, %v2614_v47 }
 0x928   :  { %1844 = vmatmul.msk.f32.gmra.mxu0 %vm83_vm0, %v2625_v52 }
 0x98d   :  { %v960_v53 = vpop.f32.mrf.mxu0  ;;  %v1145_v54 = vpop.f32.mrf.mxu1 }
 0x98e   :  { %v961_v62 = vadd.f32 %v1940_v56, %v960_v53  ;;  %v1146_v4 = vadd.f32 %v1941_v61, %v1145_v54 }
 0x992   :  { %v927_v55 = vpop.f32.mrf.mxu3  ;;  %v894_v5 = vpop.f32.mrf.mxu2 }
 0x993   :  { %v928_v7 = vadd.f32 %v1943_v63, %v927_v55  ;;  %v895_v9 = vadd.f32 %v1942_v6, %v894_v5 }
 0x995   :  { %v963_v57 = vpop.f32.mrf.mxu0  ;;  %v1148_v60 = vpop.f32.mrf.mxu1 }
 0x996   :  { %v964_v58 = vadd.f32 %v1940_v56, %v963_v57  ;;  %v1149_v1 = vadd.f32 %v1941_v61, %v1148_v60 }
 0x998   :  { %1073 = vmatpush.msrb.mxu3 %v964_v58 }
 0x99a   :  { %1074 = vmatpush.msrb.mxu3 %v961_v62  ;;  %v930_v2 = vpop.f32.mrf.mxu3  ;;  %v897_v14 = vpop.f32.mrf.mxu2 }
 0x99b   :  { %v931_v3 = vadd.f32 %v1943_v63, %v930_v2  ;;  %v898_v15 = vadd.f32 %v1942_v6, %v897_v14 }
 0x99c   :  { %1859 = vmatpush.xpose.msk.msra.mxu3 %vm246_vm8, %v1149_v1 }
 0x99d   :  { %1830 = vmatpush.xpose.msk.msrb.mxu2 %vm246_vm8, %v931_v3  ;;  %v1112_v2 = vpop.f32.mrf.mxu0  ;;  %v1944_v3 = vld [vmem:[%s2906_s8 + $0x3] ss:$0 sm:$0xff] }
 0x9a0   :  { %1860 = vmatpush.xpose.msk.msra.mxu3 %vm246_vm8, %v1146_v4  ;;  %v1113_v4 = vadd.f32 %v1944_v3, %v1112_v2 }
 0x9a1   :  { %1831 = vmatpush.xpose.msk.msrb.mxu2 %vm246_vm8, %v928_v7  ;;  %v1836_v7 = vld [vmem:[%s2865_s11 + $0x20] sm:$0xff] }
 0x9a4   :  { %1832 = vmatmul.msk.f32.vlgmr.msrb.gmra.mxu2 %vm246_vm8, %v895_v9 }
 0x9a5   :  { %1173 = vmatpush.msra.mxu2 %v1855_v8  ;;  %v1115_v5 = vpop.f32.mrf.mxu0 }
 0x9a6   :  { %v1116_v6 = vadd.f32 %v1944_v3, %v1115_v5 }
 0x9a7   :  { %1174 = vmatpush.msra.mxu2 %v1854_v11 }
 0x9a9   :  { %1175 = vmatpush.msra.mxu2 %v1853_v12 }
 0x9ab   :  { %1176 = vmatpush.msra.mxu2 %v1852_v13  ;;  %v2024_v13 = vld [vmem:[%s2907_s5] sm:$0xff] }
 0x9ac   :  { %1833 = vmatmul.msk.f32.gmra.mxu2 %vm246_vm8, %v898_v15 }
 0x9ad   :  { %1352 = vmatpush.msrb.mxu2 %v1837_v45 }
 0x9af   :  { %1353 = vmatpush.msrb.mxu2 %v1836_v7 }
 0x9b4   :  { %1857 = vmatmul.msk.f32.vlgmr.msra.gmra.mxu2 %vm83_vm0, %v2614_v47 }
 0x9bc   :  { %1858 = vmatmul.msk.f32.gmra.mxu2 %vm83_vm0, %v2625_v52 }
 0xa27   :  { %v995_v16 = vpop.f32.mrf.mxu2 }
 0xa28   :  { %v1001_v17 = vmul.f32 0.25, %v995_v16 }
 0xa2a   :  { %v1003_v18 = vadd.f32 %v1001_v17, %v2393_v31 }
 0xa2c   :  { %v1005_v19 = vsel %vm246_vm8, %v1003_v18, -inf }
 0xa2d   :  { %1006 = vmax.xlane.f32.xlu2 %v1005_v19 }
 0xa2f   :  { %v998_v20 = vpop.f32.mrf.mxu2 }
 0xa30   :  { %v1002_v21 = vmul.f32 0.25, %v998_v20 }
 0xa32   :  { %v1004_v22 = vadd.f32 %v1002_v21, %v2400_v36 }
 0xa34   :  { %v1008_v23 = vsel %vm246_vm8, %v1004_v22, -inf }
 0xa35   :  { %1009 = vmax.xlane.f32.xlu0 %v1008_v23 }
 0xa37   :  { %v1178_v24 = vpop.f32.mrf.mxu2 }
 0xa38   :  { %v1179_v28 = vadd.f32 %v1945_v25, %v1178_v24 }
 0xa3f   :  { %v1181_v26 = vpop.f32.mrf.mxu2 }
 0xa40   :  { %v1182_v27 = vadd.f32 %v1945_v25, %v1181_v26 }
 0xa42   :  { %1291 = vmatpush.msrb.mxu0 %v1182_v27 }
 0xa44   :  { %1292 = vmatpush.msrb.mxu0 %v1179_v28 }
 0xaa0   :  { %v1007_v31 = vpop.xlane.xlu2 %1006 }
 0xaa1   :  { %v1011_v29 = vsub.f32 %v1003_v18, %v1007_v31  ;;  %v2025_v18 = vld [vmem:[%s2907_s5 + $0x8] sm:$0xff] }
 0xaa3   :  { %v1013_v30 = vmul.f32 1.442695, %v1011_v29 }
 0xaa5   :  { %1988 = vpow2.f32 %v1013_v30  ;;  %v1866_v30 = vld [vmem:[%s2865_s11 + $0x38] sm:$0xff] }
 0xaa6   :  { %1323 = vmatpush.msrb.mxu1 %v1866_v30  ;;  %v1893_v30 = vld [vmem:[%s2871_s17 + $0xe0] sm:$0xff] }
 0xaa8   :  { %v1010_v0 = vpop.xlane.xlu0 %1009 }
 0xaa9   :  { %v1012_v32 = vsub.f32 %v1004_v22, %v1010_v0 }
 0xaab   :  { %v1989_v36 = vpop.eup %1988  ;;  %v1015_v33 = vmul.f32 1.442695, %v1012_v32 }
 0xaac   :  { %v1017_v34 = vsel %vm246_vm8, %v1989_v36, 0.0 }
 0xaad   :  { %1990 = vpow2.f32 %v1015_v33  ;;  %1018 = vadd.xlane.f32.xlu1 %v1017_v34 }
 0xab3   :  { %v1991_v35 = vpop.eup %1990 }
 0xab4   :  { %v1020_v37 = vsel %vm246_vm8, %v1991_v35, 0.0 }
 0xab5   :  { %1021 = vadd.xlane.f32.xlu2 %v1020_v37 }
 0xb20   :  { %v1019_v59 = vpop.xlane.xlu1 %1018 }
 0xb21   :  { %1992 = vrcp.f32 %v1019_v59  ;;  %v1034_v42 = vand.u32 2147483648, %v1019_v59  ;;  %v1032_v44 = vand.u32 2147483647, %v1019_v59  ;;  %vm1028_vm10 = vweird.f32 %v1019_v59 }
 0xb23   :  { %v1035_v49 = vor.u32 1.1754944e-38, %v1034_v42  ;;  %vm1033_vm12 = vcmp.eq.f32.partialorder %v1032_v44, 8.507059e+37 }
 0xb27   :  { %v1993_v38 = vpop.eup %1992 }
 0xb28   :  { %v1024_v39 = vmul.f32 %v1993_v38, %v1019_v59  ;;  %v1022_v40 = vpop.xlane.xlu2 %1021  ;;  %vm1029_vm9 = vweird.f32 %v1993_v38 }
 0xb29   :  { %1994 = vrcp.f32 %v1022_v40  ;;  %vm1030_vm11 = vmor %vm1028_vm10, %vm1029_vm9  ;;  %v1049_v56 = vand.u32 2147483648, %v1022_v40  ;;  %v1047_v58 = vand.u32 2147483647, %v1022_v40  ;;  %vm1043_vm14 = vweird.f32 %v1022_v40 }
 0xb2a   :  { %v1025_v41 = vsub.f32 1.0, %v1024_v39 }
 0xb2b   :  { %v1050_v61 = vor.u32 1.1754944e-38, %v1049_v56  ;;  %vm1048_vm1 = vcmp.eq.f32.partialorder %v1047_v58, 8.507059e+37  ;;  %v1865_v56 = vld [vmem:[%s2865_s11 + $0x30] sm:$0xff]  ;;  %s2107_s11 = smov 8  }
 0xb2c   :  { %v1026_v43 = vmul.f32 %v1993_v38, %v1025_v41  ;;  %1324 = vmatpush.msrb.mxu1 %v1865_v56  ;;  %v1891_v56 = vld [vmem:[%s2871_s17 + $0xd0] sm:$0xff] }
 0xb2e   :  { %v1027_v46 = vadd.f32 %v1993_v38, %v1026_v43 }
 0xb2f   :  { %v1995_v48 = vpop.eup %1994 }
 0xb30   :  { %v1031_v50 = vsel %vm1030_vm11, %v1993_v38, %v1027_v46  ;;  %v1039_v51 = vmul.f32 %v1995_v48, %v1022_v40  ;;  %vm1044_vm13 = vweird.f32 %v1995_v48 }
 0xb31   :  { %v1036_v53 = vsel %vm1033_vm12, %v1035_v49, %v1031_v50  ;;  %vm1045_vm15 = vmor %vm1043_vm14, %vm1044_vm13 }
 0xb32   :  { %v1040_v54 = vsub.f32 1.0, %v1039_v51  ;;  %v1037_v55 = vmul.f32 %v1989_v36, %v1036_v53 }
 0xb34   :  { %v1041_v57 = vmul.f32 %v1995_v48, %v1040_v54  ;;  %1834 = vmatmul.msk.f32.vlgmr.msrb.gmra.mxu3 %vm246_vm8, %v1037_v55 }
 0xb36   :  { %v1042_v60 = vadd.f32 %v1995_v48, %v1041_v57 }
 0xb38   :  { %v1046_v62 = vsel %vm1045_vm15, %v1995_v48, %v1042_v60 }
 0xb39   :  { %v1051_v63 = vsel %vm1048_vm1, %v1050_v61, %v1046_v62 }
 0xb3a   :  { %v1052_v1 = vmul.f32 %v1991_v35, %v1051_v63  ;;  %v1946_v63 = vld [vmem:[%s2866_s12 + $0x1] ss:$0 sm:$0xff]  ;;  %s1731_s12 = sshll.u32 %s2108_s23, 4  ;;  %s1732_s12 = int_to_ptr.vmem [resolvable:$true] %s1731_s12 }
 0xb3c   :  { %1835 = vmatmul.msk.f32.gmra.mxu3 %vm246_vm8, %v1052_v1 }
 0xb44   :  { %1861 = vmatmul.msk.f32.vlgmr.msra.gmra.mxu3 %vm246_vm8, %v1113_v4 }
 0xb4c   :  { %1862 = vmatmul.msk.f32.gmra.mxu3 %vm246_vm8, %v1116_v6 }
 0xbb7   :  { %v1076_v8 = vpop.f32.mrf.mxu3 }
 0xbb8   :  { %1869 = vmatmul.msk.f32.vlgmr.msrb.gmra.mxu2 %vm246_vm8, %v1076_v8 }
 0xbbf   :  { %v1079_v9 = vpop.f32.mrf.mxu3 }
 0xbc0   :  { %1870 = vmatmul.msk.f32.gmra.mxu2 %vm246_vm8, %v1079_v9 }
 0xbc7   :  { %v1213_v11 = vpop.f32.mrf.mxu3 }
 0xbc8   :  { %v1219_v12 = vmul.f32 0.25, %v1213_v11 }
 0xbca   :  { %v1221_v14 = vadd.f32 %v2024_v13, %v1219_v12 }
 0xbcc   :  { %v1223_v15 = vsel %vm246_vm8, %v1221_v14, -inf }
 0xbcd   :  { %1224 = vmax.xlane.f32.xlu0 %v1223_v15 }
 0xbcf   :  { %v1216_v16 = vpop.f32.mrf.mxu3 }
 0xbd0   :  { %v1220_v17 = vmul.f32 0.25, %v1216_v16 }
 0xbd2   :  { %v1222_v19 = vadd.f32 %v2025_v18, %v1220_v17 }
 0xbd4   :  { %v1226_v20 = vsel %vm246_vm8, %v1222_v19, -inf }
 0xbd5   :  { %1227 = vmax.xlane.f32.xlu1 %v1226_v20  ;;  %v1876_v20 = vld [vmem:[%s2869_s15 + $0x30] sm:$0xff] }
 0xc3b   :  { %v1355_v60 = vpop.f32.mrf.mxu2 }
 0xc40   :  { %v1225_v21 = vpop.xlane.xlu0 %1224 }
 0xc41   :  { %v1229_v22 = vsub.f32 %v1221_v14, %v1225_v21  ;;  %v1875_v21 = vld [vmem:[%s2869_s15 + $0x28] sm:$0xff] }
 0xc43   :  { %v1231_v23 = vmul.f32 1.442695, %v1229_v22  ;;  %v1358_v4 = vpop.f32.mrf.mxu2  ;;  %v1874_v22 = vld [vmem:[%s2869_s15 + $0x20] sm:$0xff] }
 0xc45   :  { %1996 = vpow2.f32 %v1231_v23 }
 0xc48   :  { %v1228_v24 = vpop.xlane.xlu1 %1227 }
 0xc49   :  { %v1230_v25 = vsub.f32 %v1222_v19, %v1228_v24 }
 0xc4b   :  { %v1997_v26 = vpop.eup %1996  ;;  %v1233_v27 = vmul.f32 1.442695, %v1230_v25 }
 0xc4c   :  { %v1235_v28 = vsel %vm246_vm8, %v1997_v26, 0.0 }
 0xc4d   :  { %1998 = vpow2.f32 %v1233_v27  ;;  %1236 = vadd.xlane.f32.xlu2 %v1235_v28  ;;  %v1895_v27 = vld [vmem:[%s2871_s17 + $0xf0] sm:$0xff]  ;;  %v1894_v28 = vld [vmem:[%s2871_s17 + $0xe8] sm:$0xff] }
 0xc53   :  { %v1999_v31 = vpop.eup %1998 }
 0xc54   :  { %v1238_v29 = vsel %vm246_vm8, %v1999_v31, 0.0 }
 0xc55   :  { %1239 = vadd.xlane.f32.xlu0 %v1238_v29 }
 0xcc0   :  { %v1237_v0 = vpop.xlane.xlu2 %1236 }
 0xcc1   :  { %2000 = vrcp.f32 %v1237_v0  ;;  %v1252_v35 = vand.u32 2147483648, %v1237_v0  ;;  %v1250_v59 = vand.u32 2147483647, %v1237_v0  ;;  %vm1246_vm3 = vweird.f32 %v1237_v0 }
 0xcc3   :  { %v1253_v40 = vor.u32 1.1754944e-38, %v1252_v35  ;;  %vm1251_vm5 = vcmp.eq.f32.partialorder %v1250_v59, 8.507059e+37 }
 0xcc7   :  { %v2001_v32 = vpop.eup %2000 }
 0xcc8   :  { %v1242_v36 = vmul.f32 %v2001_v32, %v1237_v0  ;;  %v1240_v33 = vpop.xlane.xlu0 %1239  ;;  %vm1247_vm2 = vweird.f32 %v2001_v32 }
 0xcc9   :  { %2002 = vrcp.f32 %v1240_v33  ;;  %vm1248_vm4 = vmor %vm1246_vm3, %vm1247_vm2  ;;  %v1267_v46 = vand.u32 2147483648, %v1240_v33  ;;  %v1265_v49 = vand.u32 2147483647, %v1240_v33  ;;  %vm1261_vm7 = vweird.f32 %v1240_v33 }
 0xcca   :  { %v1243_v34 = vsub.f32 1.0, %v1242_v36 }
 0xccb   :  { %v1268_v51 = vor.u32 1.1754944e-38, %v1267_v46  ;;  %vm1266_vm10 = vcmp.eq.f32.partialorder %v1265_v49, 8.507059e+37 }
 0xccc   :  { %v1244_v37 = vmul.f32 %v2001_v32, %v1243_v34 }
 0xcce   :  { %v1245_v38 = vadd.f32 %v2001_v32, %v1244_v37 }
 0xccf   :  { %v2003_v39 = vpop.eup %2002 }
 0xcd0   :  { %v1249_v41 = vsel %vm1248_vm4, %v2001_v32, %v1245_v38  ;;  %v1257_v42 = vmul.f32 %v2003_v39, %v1240_v33  ;;  %vm1262_vm6 = vweird.f32 %v2003_v39 }
 0xcd1   :  { %v1254_v43 = vsel %vm1251_vm5, %v1253_v40, %v1249_v41  ;;  %vm1263_vm9 = vmor %vm1261_vm7, %vm1262_vm6 }
 0xcd2   :  { %v1258_v44 = vsub.f32 1.0, %v1257_v42  ;;  %v1255_v45 = vmul.f32 %v1997_v26, %v1254_v43  ;;  %v1896_v26 = vld [vmem:[%s2871_s17 + $0xf8] sm:$0xff]  ;;  %v1948_v43 = vld [vmem:[%s2868_s14 + $0x1] ss:$0 sm:$0xff]  ;;  %s2106_s14 = smov 128  }
 0xcd3   :  { %1507 = vmatpush.msra.mxu0 %v1896_v26 }
 0xcd4   :  { %v1259_v48 = vmul.f32 %v2003_v39, %v1258_v44  ;;  %1863 = vmatmul.msk.f32.vlgmr.msrb.gmra.mxu0 %vm246_vm8, %v1255_v45 }
 0xcd5   :  { %1508 = vmatpush.msra.mxu0 %v1895_v27  ;;  %v1950_v27 = vld [vmem:[%s2872_s18 + $0x1] ss:$0 sm:$0xff]  ;;  %s1733_s18 = sshll.u32 %s2878_s24, 4  ;;  %s1734_s18 = int_to_ptr.hbm [resolvable:$true] %s1733_s18 }
 0xcd6   :  { %v1260_v50 = vadd.f32 %v2003_v39, %v1259_v48 }
 0xcd7   :  { %1509 = vmatpush.msra.mxu0 %v1894_v28 }
 0xcd8   :  { %v1264_v53 = vsel %vm1263_vm9, %v2003_v39, %v1260_v50  ;;  %v1947_v39 = vld [vmem:[%s2867_s13 + $0x1] ss:$0 sm:$0xff]  ;;  %s1717_s13 = sshll.u32 %s2105_s3, 4  ;;  %s1718_s13 = int_to_ptr.vmem [resolvable:$true] %s1717_s13 }
 0xcd9   :  { %v1269_v54 = vsel %vm1266_vm10, %v1268_v51, %v1264_v53  ;;  %1510 = vmatpush.msra.mxu0 %v1893_v30 }
 0xcda   :  { %v1270_v55 = vmul.f32 %v1999_v31, %v1269_v54 }
 0xcdc   :  { %1864 = vmatmul.msk.f32.gmra.mxu0 %vm246_vm8, %v1270_v55  ;;  %v1892_v55 = vld [vmem:[%s2871_s17 + $0xd8] sm:$0xff] }
 0xcdd   :  { %1511 = vmatpush.msra.mxu0 %v1892_v55 }
 0xcdf   :  { %1512 = vmatpush.msra.mxu0 %v1891_v56 }
 0xd51   :  { %v1294_v57 = vpop.f32.mrf.mxu0 }
 0xd52   :  { %1867 = vmatmul.msk.f32.vlgmr.msrb.gmra.mxu1 %vm246_vm8, %v1294_v57  ;;  %v1890_v57 = vld [vmem:[%s2871_s17 + $0xc8] sm:$0xff] }
 0xd53   :  { %1513 = vmatpush.msra.mxu0 %v1890_v57 }
 0xd59   :  { %v1297_v58 = vpop.f32.mrf.mxu0 }
 0xd5a   :  { %1868 = vmatmul.msk.f32.gmra.mxu1 %vm246_vm8, %v1297_v58  ;;  %v1889_v58 = vld [vmem:[%s2871_s17 + $0xc0] sm:$0xff] }
 0xd5b   :  { %1514 = vmatpush.msra.mxu0 %v1889_v58 }
 0xdcf   :  { %v1326_v61 = vpop.f32.mrf.mxu1 }
 0xdd0   :  { %v1356_v62 = vadd.f32 %v1355_v60, %v1326_v61  ;;  %v1888_v60 = vld [vmem:[%s2871_s17 + $0xb8] sm:$0xff]  ;;  %v1887_v61 = vld [vmem:[%s2871_s17 + $0xb0] sm:$0xff] }
 0xdd1   :  { %1515 = vmatpush.msra.mxu0 %v1888_v60 }
 0xdd2   :  { %v1361_v1 = vadd.f32 %v1356_v62, %v2614_v47  ;;  %v1886_v62 = vld [vmem:[%s2871_s17 + $0xa8] sm:$0xff] }
 0xdd3   :  { %1516 = vmatpush.msra.mxu0 %v1887_v61 }
 0xdd4   :  { %v1368_v2 = vadd.f32 %v1946_v63, %v1361_v1  ;;  %v1884_v1 = vld [vmem:[%s2871_s17 + $0x98] sm:$0xff] }
 0xdd5   :  { %1517 = vmatpush.msra.mxu0 %v1886_v62 }
 0xdd6   :  { %v1374_v3 = vsel %vm83_vm0, %v1368_v2, 0.0 }
 0xdd7   :  { %1375 = vadd.xlane.f32.xlu1 %v1374_v3  ;;  %v1329_v5 = vpop.f32.mrf.mxu1  ;;  %v1882_v3 = vld [vmem:[%s2871_s17 + $0x88] sm:$0xff] }
 0xdd8   :  { %v1359_v6 = vadd.f32 %v1358_v4, %v1329_v5  ;;  %v1881_v4 = vld [vmem:[%s2871_s17 + $0x80] sm:$0xff] }
 0xdd9   :  { %v1949_v5 = vld [vmem:[%s2870_s16 + $0x1] ss:$0 sm:$0xff] }
 0xdda   :  { %v1362_v7 = vadd.f32 %v1359_v6, %v2625_v52  ;;  %v1877_v52 = vld [vmem:[%s2869_s15 + $0x38] sm:$0xff]  ;;  %s2908_s15 = sld [smem:[#allocation11_spill]] }
 0xddb   :  { %1456 = vmatpush.msrb.mxu3 %v1877_v52 }
 0xddc   :  { %v1369_v8 = vadd.f32 %v1946_v63, %v1362_v7  ;;  %v1885_v63 = vld [vmem:[%s2871_s17 + $0xa0] sm:$0xff] }
 0xddd   :  { %1457 = vmatpush.msrb.mxu3 %v1876_v20  ;;  %1518 = vmatpush.msra.mxu0 %v1885_v63 }
 0xdde   :  { %v1377_v9 = vsel %vm83_vm0, %v1369_v8, 0.0 }
 0xddf   :  { %1378 = vadd.xlane.f32.xlu2 %v1377_v9  ;;  %1458 = vmatpush.msrb.mxu3 %v1875_v21 }
 0xde0   :  { %1519 = vmatpush.msra.mxu0 %v1884_v1 }
 0xde1   :  { %1459 = vmatpush.msrb.mxu3 %v1874_v22 }
 0xe4a   :  { %v1376_v11 = vpop.xlane.xlu1 %1375 }
 0xe4b   :  { %v1380_v12 = vmul.f32 %v1376_v11, %v2248_v10 }
 0xe4d   :  { %v1382_v13 = vsub.f32 %v1368_v2, %v1380_v12  ;;  %v1883_v2 = vld [vmem:[%s2871_s17 + $0x90] sm:$0xff] }
 0xe4e   :  { %1520 = vmatpush.msra.mxu0 %v1883_v2  ;;  %v1951_v2 = vld [vmem:[%s2873_s19 + $0x1] ss:$0 sm:$0xff] }
 0xe4f   :  { %v1384_v14 = vmul.f32 %v1382_v13, %v1382_v13 }
 0xe50   :  { %1521 = vmatpush.msra.mxu0 %v1882_v3 }
 0xe51   :  { %v1386_v47 = vsel %vm83_vm0, %v1384_v14, 0.0 }
 0xe52   :  { %v1379_v15 = vpop.xlane.xlu2 %1378  ;;  %1387 = vadd.xlane.f32.xlu0 %v1386_v47  ;;  %1522 = vmatpush.msra.mxu0 %v1881_v4 }
 0xe53   :  { %v1381_v16 = vmul.f32 %v1379_v15, %v2248_v10 }
 0xe55   :  { %v1383_v17 = vsub.f32 %v1369_v8, %v1381_v16 }
 0xe57   :  { %v1385_v18 = vmul.f32 %v1383_v17, %v1383_v17 }
 0xe59   :  { %v1389_v19 = vsel %vm83_vm0, %v1385_v18, 0.0 }
 0xe5a   :  { %1390 = vadd.xlane.f32.xlu1 %v1389_v19 }
 0xec5   :  { %v1388_v23 = vpop.xlane.xlu0 %1387 }
 0xec6   :  { %v1392_v24 = vmul.f32 %v1388_v23, %v2248_v10 }
 0xec8   :  { %v1394_v25 = vadd.f32 1e-12, %v1392_v24 }
 0xeca   :  { %2004 = vrsqrt.f32 %v1394_v25  ;;  %vm1402_vm11 = vweird.f32 %v1394_v25 }
 0xecd   :  { %v1391_v31 = vpop.xlane.xlu1 %1390 }
 0xece   :  { %v1393_v29 = vmul.f32 %v1391_v31, %v2248_v10 }
 0xed0   :  { %v2005_v0 = vpop.eup %2004  ;;  %v1395_v32 = vadd.f32 1e-12, %v1393_v29 }
 0xed1   :  { %v1397_v36 = vmul.f32 %v2005_v0, %v1394_v25  ;;  %vm1403_vm8 = vweird.f32 %v2005_v0 }
 0xed2   :  { %2006 = vrsqrt.f32 %v1395_v32  ;;  %vm1404_vm12 = vmor %vm1402_vm11, %vm1403_vm8  ;;  %vm1412_vm14 = vweird.f32 %v1395_v32  ;;  %vm1683_vm8 = vcmask 7168   ;;  %vm1697_vm11 = vcmask 0  }
 0xed3   :  { %v1398_v33 = vmul.f32 %v2005_v0, %v1397_v36 }
 0xed5   :  { %v1399_v34 = vmul.f32 0.5, %v1398_v33 }
 0xed7   :  { %v1400_v35 = vsub.f32 1.5, %v1399_v34 }
 0xed8   :  { %v2007_v37 = vpop.eup %2006 }
 0xed9   :  { %v1401_v59 = vmul.f32 %v2005_v0, %v1400_v35  ;;  %v1407_v38 = vmul.f32 %v2007_v37, %v1395_v32  ;;  %vm1413_vm13 = vweird.f32 %v2007_v37 }
 0xeda   :  { %vm1414_vm15 = vmor %vm1412_vm14, %vm1413_vm13 }
 0xedb   :  { %v1405_v40 = vsel %vm1404_vm12, %v2005_v0, %v1401_v59  ;;  %v1408_v41 = vmul.f32 %v2007_v37, %v1407_v38 }
 0xedc   :  { %v1416_v42 = vmul.f32 %v1405_v40, %v1382_v13 }
 0xedd   :  { %v1409_v44 = vmul.f32 0.5, %v1408_v41 }
 0xede   :  { %v1421_v45 = vmul.f32 %v1947_v39, %v1416_v42 }
 0xedf   :  { %v1410_v46 = vsub.f32 1.5, %v1409_v44  ;;  %v1593_v44 = vld [vmem:[%s2875_s21 + $0x18] sm:$0xff] }
 0xee0   :  { %v2760_v48 = vadd.f32 %v1948_v43, %v1421_v45  ;;  %1616 = vmatpush.msra.mxu1 %v1593_v44  ;;  %v1592_v45 = vld [vmem:[%s2875_s21 + $0x10] sm:$0xff] }
 0xee1   :  { %v1411_v49 = vmul.f32 %v2007_v37, %v1410_v46  ;;  %v1591_v46 = vld [vmem:[%s2875_s21 + $0x8] sm:$0xff] }
 0xee2   :  { %1879 = vmatmul.msk.f32.vlgmr.msrb.gmra.mxu3 %vm83_vm0, %v2760_v48  ;;  %1617 = vmatpush.msra.mxu1 %v1592_v45 }
 0xee3   :  { %v1415_v50 = vsel %vm1414_vm15, %v2007_v37, %v1411_v49 }
 0xee4   :  { %v1417_v51 = vmul.f32 %v1415_v50, %v1383_v17  ;;  %1618 = vmatpush.msra.mxu1 %v1591_v46 }
 0xee6   :  { %v1422_v53 = vmul.f32 %v1947_v39, %v1417_v51 }
 0xee8   :  { %v1427_v54 = vadd.f32 %v1948_v43, %v1422_v53 }
 0xeea   :  { %1880 = vmatmul.msk.f32.gmra.mxu3 %vm83_vm0, %v1427_v54 }
 0xf65   :  { %v1461_v6 = vpop.f32.mrf.mxu3 }
 0xf66   :  { %v1462_v7 = vadd.f32 %v1949_v5, %v1461_v6 }
 0xf68   :  { %v1469_v8 = vmul.f32 0.044715, %v1462_v7  ;;  %v1467_v20 = vmul.f32 0.5, %v1462_v7 }
 0xf6a   :  { %v1471_v9 = vmul.f32 %v1469_v8, %v1462_v7 }
 0xf6c   :  { %v1473_v11 = vmul.f32 %v1471_v9, %v1462_v7 }
 0xf6d   :  { %v1464_v12 = vpop.f32.mrf.mxu3 }
 0xf6e   :  { %v1465_v13 = vadd.f32 %v1949_v5, %v1464_v12  ;;  %v1475_v14 = vadd.f32 %v1473_v11, %v1462_v7  ;;  %v1952_v5 = vld [vmem:[%s2874_s20 + $0x1] ss:$0 sm:$0xff] }
 0xf70   :  { %v1477_v47 = vmul.f32 0.7978846, %v1475_v14  ;;  %v1470_v15 = vmul.f32 0.044715, %v1465_v13  ;;  %v1468_v24 = vmul.f32 0.5, %v1465_v13 }
 0xf72   :  { %2008 = vtanh.f32 %v1477_v47  ;;  %v1472_v16 = vmul.f32 %v1470_v15, %v1465_v13  ;;  %v1953_v15 = vld [vmem:[%s2876_s22] ss:$0 sm:$0xff] }
 0xf74   :  { %v1474_v17 = vmul.f32 %v1472_v16, %v1465_v13 }
 0xf76   :  { %v1476_v18 = vadd.f32 %v1474_v17, %v1465_v13 }
 0xf78   :  { %v2009_v19 = vpop.eup %2008  ;;  %v1478_v52 = vmul.f32 0.7978846, %v1476_v18 }
 0xf79   :  { %v1481_v21 = vadd.f32 1.0, %v2009_v19 }
 0xf7a   :  { %2010 = vtanh.f32 %v1478_v52  ;;  %v1629_v52 = vld [vmem:[%s2908_s15] sm:$0xff] }
 0xf7b   :  { %v1483_v22 = vmul.f32 %v1481_v21, %v1467_v20  ;;  %v2103_v20 = vmov 0   ;;  %vm1675_vm10 = vcmp.ne.s32.totalorder %v1629_v52, 4294967196 }
 0xf7c   :  { %1922 = vset.pattern.permute.xlu1 %v2103_v20  ;;  %1923 = vset.pattern.permute.xlu2 %v2103_v20 }
 0xf7d   :  { %1523 = vmatmul.f32.vlgmr.msra.gmra.mxu0 %v1483_v22  ;;  %1924 = vset.pattern.permute.xlu0 %v2103_v20 }
 0xf80   :  { %v2011_v23 = vpop.eup %2010 }
 0xf81   :  { %v1482_v25 = vadd.f32 1.0, %v2011_v23 }
 0xf83   :  { %v1484_v26 = vmul.f32 %v1482_v25, %v1468_v24 }
 0xf85   :  { %1526 = vmatmul.f32.gmra.mxu0 %v1484_v26 }
 0xffa   :  { %v1524_v28 = vpop.f32.mrf.mxu0 }
 0xffb   :  { %v1525_v31 = vadd.f32 %v1950_v27, %v1524_v28 }
 0xffd   :  { %v1530_v29 = vadd.f32 %v1525_v31, %v2760_v48  ;;  %v1590_v48 = vld [vmem:[%s2875_s21] sm:$0xff]  ;;  %v1630_v31 = vld [vmem:[%s2908_s15 + $0x8] sm:$0xff] }
 0xffe   :  { %1619 = vmatpush.msra.mxu1 %v1590_v48  ;;  %vm1676_vm9 = vcmp.ne.s32.totalorder %v1630_v31, 4294967196 }
 0xfff   :  { %v1536_v30 = vsel %vm83_vm0, %v1530_v29, 0.0 }
0x1000   :  { %1537 = vadd.xlane.f32.xlu2 %v1536_v30  ;;  %v1653_v30 = vlaneseq }
0x1002   :  { %v1527_v0 = vpop.f32.mrf.mxu0 }
0x1003   :  { %v1528_v32 = vadd.f32 %v1950_v27, %v1527_v0  ;;  %v1654_v0 = vand.u32 127, %v1653_v30 }
0x1005   :  { %v1531_v36 = vadd.f32 %v1528_v32, %v1427_v54 }
0x1007   :  { %v1539_v33 = vsel %vm83_vm0, %v1531_v36, 0.0 }
0x1008   :  { %1540 = vadd.xlane.f32.xlu0 %v1539_v33 }
0x1073   :  { %v1538_v34 = vpop.xlane.xlu2 %1537 }
0x1074   :  { %v1542_v35 = vmul.f32 %v1538_v34, %v2248_v10 }
0x1076   :  { %v1544_v37 = vsub.f32 %v1530_v29, %v1542_v35 }
0x1078   :  { %v1546_v59 = vmul.f32 %v1544_v37, %v1544_v37 }
0x107a   :  { %v1548_v38 = vsel %vm83_vm0, %v1546_v59, 0.0 }
0x107b   :  { %1549 = vadd.xlane.f32.xlu1 %v1548_v38  ;;  %v1541_v39 = vpop.xlane.xlu0 %1540 }
0x107c   :  { %v1543_v40 = vmul.f32 %v1541_v39, %v2248_v10 }
0x107e   :  { %v1545_v41 = vsub.f32 %v1531_v36, %v1543_v40 }
0x1080   :  { %v1547_v42 = vmul.f32 %v1545_v41, %v1545_v41 }
0x1082   :  { %v1551_v43 = vsel %vm83_vm0, %v1547_v42, 0.0 }
0x1083   :  { %1552 = vadd.xlane.f32.xlu2 %v1551_v43 }
0x10ee   :  { %v1550_v49 = vpop.xlane.xlu1 %1549 }
0x10ef   :  { %v1554_v50 = vmul.f32 %v1550_v49, %v2248_v10 }
0x10f1   :  { %v1556_v51 = vadd.f32 1e-12, %v1554_v50 }
0x10f3   :  { %2012 = vrsqrt.f32 %v1556_v51  ;;  %vm1564_vm2 = vweird.f32 %v1556_v51 }
0x10f6   :  { %v1553_v53 = vpop.xlane.xlu2 %1552 }
0x10f7   :  { %v1555_v54 = vmul.f32 %v1553_v53, %v2248_v10 }
0x10f9   :  { %v2013_v55 = vpop.eup %2012  ;;  %v1557_v56 = vadd.f32 1e-12, %v1555_v54 }
0x10fa   :  { %v1559_v57 = vmul.f32 %v2013_v55, %v1556_v51  ;;  %vm1565_vm1 = vweird.f32 %v2013_v55 }
0x10fb   :  { %2014 = vrsqrt.f32 %v1557_v56  ;;  %vm1566_vm3 = vmor %vm1564_vm2, %vm1565_vm1  ;;  %vm1574_vm5 = vweird.f32 %v1557_v56 }
0x10fc   :  { %v1560_v58 = vmul.f32 %v2013_v55, %v1559_v57 }
0x10fe   :  { %v1561_v60 = vmul.f32 0.5, %v1560_v58 }
0x1100   :  { %v1562_v61 = vsub.f32 1.5, %v1561_v60 }
0x1101   :  { %v2015_v62 = vpop.eup %2014 }
0x1102   :  { %v1563_v63 = vmul.f32 %v2013_v55, %v1562_v61  ;;  %v1569_v1 = vmul.f32 %v2015_v62, %v1557_v56  ;;  %vm1575_vm4 = vweird.f32 %v2015_v62 }
0x1103   :  { %vm1576_vm6 = vmor %vm1574_vm5, %vm1575_vm4 }
0x1104   :  { %v1567_v3 = vsel %vm1566_vm3, %v2013_v55, %v1563_v63  ;;  %v1570_v4 = vmul.f32 %v2015_v62, %v1569_v1 }
0x1105   :  { %v1578_v10 = vmul.f32 %v1567_v3, %v1544_v37  ;;  %v2104_v37 = vmov 0.0  }
0x1106   :  { %v1571_v6 = vmul.f32 0.5, %v1570_v4  ;;  %v1905_v48 = vsel %vm1676_vm9, 1.0, %v2104_v37  ;;  %v1904_v49 = vsel %vm1675_vm10, 1.0, %v2104_v37 }
0x1107   :  { %v1583_v7 = vmul.f32 %v1951_v2, %v1578_v10  ;;  %v1699_v50 = vsel %vm1683_vm8, %v1904_v49, 0.0  ;;  %v1700_v51 = vsel %vm1683_vm8, %v1905_v48, 0.0 }
0x1108   :  { %v1572_v8 = vsub.f32 1.5, %v1571_v6  ;;  %v1701_v53 = vadd.f32 %v1700_v51, %v1699_v50 }
0x1109   :  { %v1588_v9 = vadd.f32 %v1952_v5, %v1583_v7 }
0x110a   :  { %v1573_v11 = vmul.f32 %v2015_v62, %v1572_v8 }
0x110b   :  { %1900 = vmatmul.msk.f32.vlgmr.msra.gmra.mxu1 %vm83_vm0, %v1588_v9 }
0x110c   :  { %v1577_v12 = vsel %vm1576_vm6, %v2015_v62, %v1573_v11 }
0x110d   :  { %v1579_v13 = vmul.f32 %v1577_v12, %v1545_v41 }
0x110f   :  { %v1584_v14 = vmul.f32 %v1951_v2, %v1579_v13 }
0x1111   :  { %v1589_v47 = vadd.f32 %v1952_v5, %v1584_v14 }
0x1113   :  { %1901 = vmatmul.msk.f32.gmra.mxu1 %vm83_vm0, %v1589_v47 }
0x1188   :  { %v1621_v16 = vpop.f32.mrf.mxu1 }
0x1189   :  { %v1622_v17 = vadd.f32 %v1953_v15, %v1621_v16 }
0x118b   :  { %1627 = vst [vmem:[#allocation2] sm:$0xff] %v1622_v17  ;;  %1631 = vmax.xlane.f32.xlu0 %v1622_v17 }
0x1190   :  { %v1624_v18 = vpop.f32.mrf.mxu1 }
0x1191   :  { %v1625_v19 = vadd.f32 %v1953_v15, %v1624_v18 }
0x1193   :  { %1628 = vst [vmem:[#allocation2 + $0x8] sm:$0xff] %v1625_v19  ;;  %1633 = vmax.xlane.f32.xlu1 %v1625_v19 }
0x1194   :  { %1725 = dma.vmem_to_hbm [thread:$0]  %s1718_s13, 256, %s1720_s6, [#allocation3], %s2106_s14, %s2106_s14, %s2107_s11  }
0x11ac   :  { %1656 = vperm.xlu1 %1922, %v1629_v52  }
0x11fe   :  { %v1632_v21 = vpop.xlane.xlu0 %1631 }
0x11ff   :  { %v1635_v22 = vsub.f32 %v1622_v17, %v1632_v21 }
0x1201   :  { %v1637_v23 = vmul.f32 1.442695, %v1635_v22 }
0x1203   :  { %2016 = vpow2.f32 %v1637_v23 }
0x1206   :  { %v1634_v24 = vpop.xlane.xlu1 %1633 }
0x1207   :  { %v1636_v25 = vsub.f32 %v1625_v19, %v1634_v24 }
0x1209   :  { %v2017_v26 = vpop.eup %2016  ;;  %v1639_v27 = vmul.f32 1.442695, %v1636_v25 }
0x120a   :  { %1641 = vadd.xlane.f32.xlu2 %v2017_v26 }
0x120b   :  { %2018 = vpow2.f32 %v1639_v27 }
0x1211   :  { %v2019_v28 = vpop.eup %2018 }
0x1212   :  { %1643 = vadd.xlane.f32.xlu0 %v2019_v28 }
0x121e   :  { %v1657_v32 = vpop.permute.xlu1 %1656 }
0x121f   :  { %vm1661_vm0 = vcmp.eq.s32.totalorder %v1654_v0, %v1657_v32 }
0x1220   :  { %v1902_v59 = vsel %vm1661_vm0, 1.0, %v2104_v37 }
0x1222   :  { %1659 = vperm.xlu2 %1923, %v1630_v31  }
0x124b   :  { %1702 = vadd.xlane.f32.xlu2 %v1701_v53 }
0x127d   :  { %v1642_v29 = vpop.xlane.xlu2 %1641 }
0x127e   :  { %2020 = vlog2.f32 %v1642_v29 }
0x1284   :  { %v2021_v36 = vpop.eup %2020 }
0x1285   :  { %v1646_v33 = vmul.f32 0.6931472, %v2021_v36  ;;  %v1644_v34 = vpop.xlane.xlu0 %1643  ;;  %v1660_v39 = vpop.permute.xlu2 %1659 }
0x1286   :  { %2022 = vlog2.f32 %v1644_v34  ;;  %vm1662_vm7 = vcmp.eq.s32.totalorder %v1654_v0, %v1660_v39 }
0x1287   :  { %v1649_v35 = vadd.f32 %v1646_v33, %v1632_v21  ;;  %v1903_v44 = vsel %vm1662_vm7, 1.0, %v2104_v37 }
0x1289   :  { %v1651_v38 = vsub.f32 %v1622_v17, %v1649_v35 }
0x128b   :  { %v1667_v40 = vmul.f32 %v1902_v59, %v1651_v38 }
0x128c   :  { %v2023_v41 = vpop.eup %2022 }
0x128d   :  { %v1648_v42 = vmul.f32 0.6931472, %v2023_v41  ;;  %1669 = vadd.xlane.f32.xlu0 %v1667_v40 }
0x128f   :  { %v1650_v43 = vadd.f32 %v1648_v42, %v1634_v24 }
0x1291   :  { %v1652_v45 = vsub.f32 %v1625_v19, %v1650_v43 }
0x1293   :  { %v1668_v46 = vmul.f32 %v1903_v44, %v1652_v45 }
0x1295   :  { %1671 = vadd.xlane.f32.xlu0 %v1668_v46 }
0x12be   :  { %v1703_v1 = vpop.xlane.xlu2 %1702 }
0x12bf   :  { %v1704_v2 = vrot.slane %v1703_v1, 4 }
0x12c1   :  { %v1705_v3 = vadd.f32 %v1704_v2, %v1703_v1 }
0x12c3   :  { %v1706_v10 = vrot.slane %v1705_v3, 2 }
0x12c5   :  { %v1707_v7 = vadd.f32 %v1706_v10, %v1705_v3 }
0x12c7   :  { %v1708_v11 = vrot.slane %v1707_v7, 1 }
0x12c9   :  { %v1709_v14 = vadd.f32 %v1708_v11, %v1707_v7 }
0x1300   :  { %v1670_v54 = vpop.xlane.xlu0 %1669 }
0x1301   :  { %v1673_v55 = vsub.f32 0.0, %v1670_v54 }
0x1303   :  { %v1681_v57 = vmul.f32 %v1904_v49, %v1673_v55 }
0x1305   :  { %v1684_v61 = vsel %vm1683_vm8, %v1681_v57, 0.0 }
0x1308   :  { %v1672_v56 = vpop.xlane.xlu0 %1671 }
0x1309   :  { %v1674_v58 = vsub.f32 0.0, %v1672_v56 }
0x130b   :  { %v1682_v60 = vmul.f32 %v1905_v48, %v1674_v58 }
0x130d   :  { %v1685_v62 = vsel %vm1683_vm8, %v1682_v60, 0.0 }
0x130e   :  { %v1686_v63 = vadd.f32 %v1685_v62, %v1684_v61 }
0x1310   :  { %1687 = vadd.xlane.f32.xlu0 %v1686_v63 }
0x1383   :  { %v1688_v4 = vpop.xlane.xlu0 %1687 }
0x1384   :  { %v1689_v5 = vrot.slane %v1688_v4, 4 }
0x1386   :  { %v1690_v6 = vadd.f32 %v1689_v5, %v1688_v4 }
0x1388   :  { %v1691_v8 = vrot.slane %v1690_v6, 2 }
0x138a   :  { %v1692_v9 = vadd.f32 %v1691_v8, %v1690_v6 }
0x138c   :  { %v1693_v12 = vrot.slane %v1692_v9, 1 }
0x138e   :  { %v1694_v13 = vadd.f32 %v1693_v12, %v1692_v9 }
0x1390   :  { %1910 = vpush %v1694_v13 }
0x1391   :  { %1912 = vpush %v1709_v14 }
0x13c1   :  { %s1911_s28 = spop %1910 }
0x13c2   :  { %v1696_v47 = vstv %s1911_s28  ;;  %s1913_s21 = spop %1912 }
0x13c3   :  { %1698 = vst.msk [vmem:[#allocation4] sm:$0x1] %vm1697_vm11, %v1696_v47  ;;  %v1711_v15 = vstv %s1913_s21 }
0x13c4   :  { %1712 = vst.msk [vmem:[#allocation6] sm:$0x1] %vm1697_vm11, %v1711_v15  ;;  %1736 = dma.vmem_to_hbm [thread:$0]  %s1732_s12, 16, %s1734_s18, [#allocation5]  }
0x13c5   :  { %1747 = dma.vmem_to_hbm [thread:$0]  %s1743_s10, 16, %s1745_s4, [#allocation5]  }
0x13c6   :  { %2098 = dma.done.wait [#allocation3], 256  }
0x13c7   :  { %2099 = vsyncadd [#allocation3], 4294967040 }
0x13c8   :  { %2100 = dma.done.wait [#allocation5], 32  }
0x13c9   :  { %2101 = vsyncadd [#allocation5], 4294967264 }
0x13ca   :  { %1760 = vsyncpa [#allocation3], 1 }
0x13cb   :  { %1761 = vsyncpa [#allocation5], 1 }

</bundles_post_ra>
